<compile_context>
chip_gen: v7x
topology: tpu7x:2x2x1
jax: 0.10.0
libtpu: 0.0.40
codegen_flags: <defaults>
</compile_context>

<pallas_src>
import numpy as np
import jax
import jax.numpy as jnp
from jax.experimental import pallas as pl
from jax.experimental.pallas import tpu as pltpu


def _sigmoid(x):
    # tanh form: one EUP op instead of exp + divide, and no overflow for large |x|.
    return 0.5 * (jnp.tanh(0.5 * x) + 1.0)


def nc_policy_kernel(zin_ref, done_ref, h0_ref, c0_ref,
                     wcat_ref, bcat_ref, wg_ref, gs_ref, gdT_ref, adj_ref,
                     wlstm_ref, bl_ref, wa_ref, ba_ref,
                     probs_ref, hout_ref, cout_ref,
                     s_buf, gates_buf, logits_buf):
    NP = zin_ref.shape[0]          # padded agent count (multiple of 8)
    H = h0_ref.shape[1]

    # ---- phase 1: per-agent fused comm-feature matmul (block-diag weights) -> scratch
    for i in range(NP):            # NP is small & static -> unrolled at trace time
        s_buf[pl.ds(i, 1), :] = jnp.dot(
            zin_ref[pl.ds(i, 1), :], wcat_ref[i],
            preferred_element_type=jnp.float32)
    # vectorized bias + ReLU over the whole (NP, 3F) block
    s = jnp.maximum(s_buf[...] + bcat_ref[...], 0.0)                          # (NP, 3F)

    # ---- single-head GraphAttention (pyGAT semantics, eval mode)
    wh = jnp.dot(s, wg_ref[...], preferred_element_type=jnp.float32)          # (NP, 3F)
    # attention logits issued straight from s (prepacked Wg@a_src / a_dst@Wg^T)
    e_src = jnp.dot(s, gs_ref[...], preferred_element_type=jnp.float32)       # (NP, 1)
    e_dst = jax.lax.dot_general(gdT_ref[...], s, (((1,), (1,)), ((), ())),
                                preferred_element_type=jnp.float32)           # (1, NP)
    e = e_src + e_dst                                                         # (NP, NP)
    e = jnp.where(e > 0, e, 0.2 * e)                                          # LeakyReLU(0.2)
    e = jnp.where(adj_ref[...] > 0, e, jnp.float32(-9e15))
    e = e - jnp.max(e, axis=1, keepdims=True)
    p = jnp.exp(e)
    att = p * pl.reciprocal(jnp.sum(p, axis=1, keepdims=True), approx=True)
    gat = jnp.dot(att, wh, preferred_element_type=jnp.float32)                # (NP, 3F)
    s_after = jnp.where(gat > 0, gat, jnp.exp(jnp.minimum(gat, 0.0)) - 1.0)   # ELU

    # ---- LSTM: per-agent fused [x|h] matmul -> scratch; all gate math vectorized
    mask = 1.0 - done_ref[...]                                                # (NP, 1)
    h_in = h0_ref[...] * mask
    c_in = c0_ref[...] * mask
    zl = jnp.concatenate([s_after, h_in], axis=1)                             # (NP, 3F+H)
    for i in range(NP):
        gates_buf[pl.ds(i, 1), :] = jnp.dot(
            zl[i:i + 1], wlstm_ref[i], preferred_element_type=jnp.float32)
    gates = gates_buf[...] + bl_ref[...]                                      # (NP, 4H)
    i_g = _sigmoid(gates[:, 0:H])
    f_g = _sigmoid(gates[:, H:2 * H])
    g_g = jnp.tanh(gates[:, 2 * H:3 * H])
    o_g = _sigmoid(gates[:, 3 * H:4 * H])
    c_new = f_g * c_in + i_g * g_g
    h_new = o_g * jnp.tanh(c_new)

    # ---- actor heads: per-agent matmul -> scratch; softmax + stores vectorized
    for i in range(NP):
        logits_buf[pl.ds(i, 1), :] = jnp.dot(
            h_new[i:i + 1], wa_ref[i], preferred_element_type=jnp.float32)
    logits = logits_buf[...] + ba_ref[...]
    logits = logits - jnp.max(logits, axis=1, keepdims=True)
    ez = jnp.exp(logits)
    probs_ref[...] = ez * pl.reciprocal(jnp.sum(ez, axis=1, keepdims=True),
                                        approx=True)
    hout_ref[...] = h_new
    cout_ref[...] = c_new


def prepack_params(P, n_fc, n_h, n_a):
    """One-time weight fusion + agent-axis padding for the kernel."""
    N = P['Wx'].shape[0]
    NP = ((N + 7) // 8) * 8        # pad agent axis to a full sublane group
    F3 = 3 * n_fc
    Kx, Kp, Km = P['Wx'].shape[1], P['Wp'].shape[1], P['Wm'].shape[1]
    K = Kx + Kp + Km

    Wcat = np.zeros((NP, K, F3), np.float32)          # blockdiag(Wx, Wp, Wm) per agent
    Wcat[:N, :Kx, :n_fc] = np.asarray(P['Wx'])
    Wcat[:N, Kx:Kx + Kp, n_fc:2 * n_fc] = np.asarray(P['Wp'])
    Wcat[:N, Kx + Kp:, 2 * n_fc:] = np.asarray(P['Wm'])
    bcat = np.zeros((NP, F3), np.float32)
    bcat[:N] = np.concatenate([np.asarray(P['bx']), np.asarray(P['bp']),
                               np.asarray(P['bm'])], axis=1)

    Wg = np.asarray(P['Wg'])
    gs = Wg @ np.asarray(P['asrc'])                   # (F3, 1): e_src = s @ gs
    gdT = np.asarray(P['adst']) @ Wg.T                # (1, F3): e_dst = gdT contracted with s

    adj = np.zeros((NP, NP), np.float32)
    adj[:N, :N] = np.asarray(P['adj'])

    Wlstm = np.zeros((NP, F3 + n_h, 4 * n_h), np.float32)   # [Wih ; Whh] per agent
    Wlstm[:N] = np.concatenate([np.asarray(P['Wih']), np.asarray(P['Whh'])], axis=1)
    bl = np.zeros((NP, 4 * n_h), np.float32)
    bl[:N] = np.asarray(P['bl'])
    Wa = np.zeros((NP, n_h, n_a), np.float32)
    Wa[:N] = np.asarray(P['Wa'])
    ba = np.zeros((NP, n_a), np.float32)
    ba[:N] = np.asarray(P['ba'])

    KP = {k: jnp.asarray(v) for k, v in dict(
        Wcat=Wcat, bcat=bcat, Wg=Wg, gs=gs, gdT=gdT, adj=adj,
        Wlstm=Wlstm, bl=bl, Wa=Wa, ba=ba).items()}
    KP['nbr_idx'] = P['nbr_idx']
    KP['N'], KP['NP'] = N, NP
    return KP


def nc_policy_forward(KP, ob, done, fp, states):
    """Single-step inference.  ob:(N,n_s)  done:(N,)  fp:(N,n_a)  states:(N,2H)."""
    N, NP = KP['N'], KP['NP']
    H = states.shape[1] // 2
    n_a = KP['ba'].shape[1]
    F3 = KP['Wg'].shape[0]
    nbr = KP['nbr_idx']
    h0, c0 = states[:, :H], states[:, H:]

    # glue: neighbor gathers + fused fc input [x | p | m] per agent
    xin = jnp.concatenate([ob[:, None, :], ob[nbr]], axis=1).reshape(N, -1)
    pin = fp[nbr].reshape(N, -1)
    min_ = h0[nbr].reshape(N, -1)
    zin = jnp.concatenate([xin, pin, min_], axis=1)
    done2 = done.reshape(N, 1).astype(jnp.float32)

    pad = NP - N
    zin = jnp.pad(zin, ((0, pad), (0, 0)))
    done2 = jnp.pad(done2, ((0, pad), (0, 0)))
    h0p = jnp.pad(h0, ((0, pad), (0, 0)))
    c0p = jnp.pad(c0, ((0, pad), (0, 0)))

    vmem = pl.BlockSpec(memory_space=pltpu.MemorySpace.VMEM)
    probs_p, h_p, c_p = pl.pallas_call(
        nc_policy_kernel,
        out_shape=(jax.ShapeDtypeStruct((NP, n_a), jnp.float32),
                   jax.ShapeDtypeStruct((NP, H), jnp.float32),
                   jax.ShapeDtypeStruct((NP, H), jnp.float32)),
        in_specs=[vmem] * 14,
        out_specs=(vmem, vmem, vmem),
        scratch_shapes=[pltpu.VMEM((NP, F3), jnp.float32),
                        pltpu.VMEM((NP, 4 * H), jnp.float32),
                        pltpu.VMEM((NP, n_a), jnp.float32)],
    )(zin, done2, h0p, c0p,
      KP['Wcat'], KP['bcat'], KP['Wg'], KP['gs'], KP['gdT'], KP['adj'],
      KP['Wlstm'], KP['bl'], KP['Wa'], KP['ba'])

    probs = probs_p[:N]
    new_states = jnp.concatenate([h_p[:N], c_p[:N]], axis=1)
    return probs, new_states


def reference_forward(P, ob, done, fp, states):
    """Pure-JAX reference (same math, unfused weights) for correctness check."""
    N, H = states.shape[0], states.shape[1] // 2
    nbr = P['nbr_idx']
    h0, c0 = states[:, :H], states[:, H:]
    xin = jnp.concatenate([ob[:, None, :], ob[nbr]], axis=1).reshape(N, -1)
    pin = fp[nbr].reshape(N, -1)
    min_ = h0[nbr].reshape(N, -1)
    done2 = done.reshape(N, 1).astype(jnp.float32)

    sx = jax.nn.relu(jnp.einsum('nd,ndf->nf', xin, P['Wx']) + P['bx'])
    sp = jax.nn.relu(jnp.einsum('nd,ndf->nf', pin, P['Wp']) + P['bp'])
    sm = jax.nn.relu(jnp.einsum('nd,ndf->nf', min_, P['Wm']) + P['bm'])
    s = jnp.concatenate([sx, sp, sm], axis=1)
    wh = s @ P['Wg']
    e = wh @ P['asrc'] + P['adst'] @ wh.T
    e = jnp.where(e > 0, e, 0.2 * e)
    e = jnp.where(P['adj'] > 0, e, -9e15)
    att = jax.nn.softmax(e, axis=1)
    gat = att @ wh
    s_after = jnp.where(gat > 0, gat, jnp.exp(jnp.minimum(gat, 0.0)) - 1.0)

    m = 1.0 - done2
    h_in, c_in = h0 * m, c0 * m
    gates = (jnp.einsum('nd,ndf->nf', s_after, P['Wih'])
             + jnp.einsum('nd,ndf->nf', h_in, P['Whh']) + P['bl'])
    i_g = jax.nn.sigmoid(gates[:, :H])
    f_g = jax.nn.sigmoid(gates[:, H:2 * H])
    g_g = jnp.tanh(gates[:, 2 * H:3 * H])
    o_g = jax.nn.sigmoid(gates[:, 3 * H:])
    c_new = f_g * c_in + i_g * g_g
    h_new = o_g * jnp.tanh(c_new)
    logits = jnp.einsum('nh,nha->na', h_new, P['Wa']) + P['ba']
    probs = jax.nn.softmax(logits, axis=-1)
    return probs, jnp.concatenate([h_new, c_new], axis=1)


def make_params(key, n_s, n_a, n_agent, n_fc, n_h, neighbor_mask):
    """Deterministic synthetic parameter init (shapes follow _init_net)."""
    n_n = int(neighbor_mask[0].sum())
    assert all(int(r.sum()) == n_n for r in neighbor_mask), "uniform neighbor count required"
    F3 = 3 * n_fc

    def nrm(k, shape, scale=0.1):
        return scale * jax.random.normal(k, shape, dtype=jnp.float32)

    ks = jax.random.split(key, 16)
    P = {
        'Wx':  nrm(ks[0], (n_agent, (n_n + 1) * n_s, n_fc)),
        'bx':  nrm(ks[1], (n_agent, n_fc), 0.01),
        'Wp':  nrm(ks[2], (n_agent, n_n * n_a, n_fc)),
        'bp':  nrm(ks[3], (n_agent, n_fc), 0.01),
        'Wm':  nrm(ks[4], (n_agent, n_n * n_h, n_fc)),
        'bm':  nrm(ks[5], (n_agent, n_fc), 0.01),
        'Wg':  nrm(ks[6], (F3, F3)),
        'Wih': nrm(ks[8], (n_agent, F3, 4 * n_h)),
        'Whh': nrm(ks[9], (n_agent, n_h, 4 * n_h)),
        'bl':  nrm(ks[10], (n_agent, 4 * n_h), 0.01),
        'Wa':  nrm(ks[11], (n_agent, n_h, n_a)),
        'ba':  nrm(ks[12], (n_agent, n_a), 0.01),
    }
    a_vec = nrm(ks[7], (2 * F3,))
    P['asrc'] = a_vec[:F3].reshape(F3, 1)
    P['adst'] = a_vec[F3:].reshape(1, F3)
    adj = neighbor_mask.astype(np.float32) + np.eye(n_agent, dtype=np.float32)
    P['adj'] = jnp.asarray(adj)
    nbr_idx = np.stack([np.where(neighbor_mask[i])[0] for i in range(n_agent)], axis=0)
    P['nbr_idx'] = jnp.asarray(nbr_idx, dtype=jnp.int32)
    return P


if __name__ == "__main__":
    # small synthetic config: 4 agents on a ring (each agent has 2 neighbors)
    n_agent, n_s, n_a, n_fc, n_h = 4, 16, 8, 32, 32
    neighbor_mask = np.zeros((n_agent, n_agent), dtype=bool)
    for i in range(n_agent):
        neighbor_mask[i, (i - 1) % n_agent] = True
        neighbor_mask[i, (i + 1) % n_agent] = True

    key = jax.random.PRNGKey(0)
    kp, ko, kf, ks = jax.random.split(key, 4)
    P = make_params(kp, n_s, n_a, n_agent, n_fc, n_h, neighbor_mask)
    KP = prepack_params(P, n_fc, n_h, n_a)           # fused + padded kernel weights

    ob = jax.random.normal(ko, (n_agent, n_s), dtype=jnp.float32)
    fp = jax.random.uniform(kf, (n_agent, n_a), dtype=jnp.float32)
    done = jnp.array([0.0, 1.0, 0.0, 0.0], dtype=jnp.float32)
    states_fw = 0.5 * jax.random.normal(ks, (n_agent, 2 * n_h), dtype=jnp.float32)

    probs, new_states = nc_policy_forward(KP, ob, done, fp, states_fw)
    probs = jax.block_until_ready(probs)
    new_states = jax.block_until_ready(new_states)

    ref_probs, ref_states = reference_forward(P, ob, done, fp, states_fw)
    # tolerances widened slightly vs. exact-divide version: the kernel uses the
    # EUP approximate reciprocal for both softmax denominators.
    np.testing.assert_allclose(np.asarray(probs), np.asarray(ref_probs), rtol=2e-3, atol=2e-3)
    np.testing.assert_allclose(np.asarray(new_states), np.asarray(ref_states), rtol=2e-3, atol=2e-3)
    np.testing.assert_allclose(np.asarray(probs).sum(axis=-1), np.ones(n_agent), rtol=2e-3, atol=2e-3)

    print("KERNEL_OK")
</pallas_src>

<mosaic_0001>
module attributes {stable_mosaic.version = 11 : i64} {
  func.func @nc_policy_kernel(%arg0: memref<8x128xf32, #tpu.memory_space<vmem>>, %arg1: memref<8x1xf32, #tpu.memory_space<vmem>>, %arg2: memref<8x32xf32, #tpu.memory_space<vmem>>, %arg3: memref<8x32xf32, #tpu.memory_space<vmem>>, %arg4: memref<8x128x96xf32, #tpu.memory_space<vmem>>, %arg5: memref<8x96xf32, #tpu.memory_space<vmem>>, %arg6: memref<96x96xf32, #tpu.memory_space<vmem>>, %arg7: memref<96x1xf32, #tpu.memory_space<vmem>>, %arg8: memref<1x96xf32, #tpu.memory_space<vmem>>, %arg9: memref<8x8xf32, #tpu.memory_space<vmem>>, %arg10: memref<8x128x128xf32, #tpu.memory_space<vmem>>, %arg11: memref<8x128xf32, #tpu.memory_space<vmem>>, %arg12: memref<8x32x8xf32, #tpu.memory_space<vmem>>, %arg13: memref<8x8xf32, #tpu.memory_space<vmem>>, %arg14: memref<8x8xf32, #tpu.memory_space<vmem>>, %arg15: memref<8x32xf32, #tpu.memory_space<vmem>>, %arg16: memref<8x32xf32, #tpu.memory_space<vmem>>, %arg17: memref<8x96xf32, #tpu.memory_space<vmem>>, %arg18: memref<8x128xf32, #tpu.memory_space<vmem>>, %arg19: memref<8x8xf32, #tpu.memory_space<vmem>>) attributes {dimension_semantics = [], scalar_prefetch = 0 : i64, scratch_operands = 3 : i64, tpu.core_type = #tpu.core_type<tc>} {
    %c0 = arith.constant 0 : index
    %c0_0 = arith.constant 0 : index
    %0 = vector.load %arg0[%c0, %c0_0] : memref<8x128xf32, #tpu.memory_space<vmem>>, vector<1x128xf32>
    %c0_1 = arith.constant 0 : index
    %c0_2 = arith.constant 0 : index
    %c0_3 = arith.constant 0 : index
    %1 = vector.load %arg4[%c0_1, %c0_2, %c0_3] : memref<8x128x96xf32, #tpu.memory_space<vmem>>, vector<1x128x96xf32>
    %2 = vector.shape_cast %1 : vector<1x128x96xf32> to vector<128x96xf32>
    %cst = arith.constant dense<0.000000e+00> : vector<1x96xf32>
    %3 = tpu.matmul %0, %2, %cst {dimension_numbers = #tpu.dot_dimension_numbers<[1], [0], [0], [1], [0, 0, 1, 1], [], []>} : vector<1x128xf32>, vector<128x96xf32>, vector<1x96xf32> -> vector<1x96xf32>
    %c0_4 = arith.constant 0 : index
    %c0_5 = arith.constant 0 : index
    %4 = vector.load %arg17[%c0_4, %c0_5] : memref<8x96xf32, #tpu.memory_space<vmem>>, vector<1x96xf32>
    tpu.vector_store %arg17[%c0_4, %c0_5], %3 {strides = array<i32>} : memref<8x96xf32, #tpu.memory_space<vmem>>, vector<1x96xf32>,
    %c1 = arith.constant 1 : index
    %c0_6 = arith.constant 0 : index
    %5 = vector.load %arg0[%c1, %c0_6] : memref<8x128xf32, #tpu.memory_space<vmem>>, vector<1x128xf32>
    %c1_7 = arith.constant 1 : index
    %c0_8 = arith.constant 0 : index
    %c0_9 = arith.constant 0 : index
    %6 = vector.load %arg4[%c1_7, %c0_8, %c0_9] : memref<8x128x96xf32, #tpu.memory_space<vmem>>, vector<1x128x96xf32>
    %7 = vector.shape_cast %6 : vector<1x128x96xf32> to vector<128x96xf32>
    %cst_10 = arith.constant dense<0.000000e+00> : vector<1x96xf32>
    %8 = tpu.matmul %5, %7, %cst_10 {dimension_numbers = #tpu.dot_dimension_numbers<[1], [0], [0], [1], [0, 0, 1, 1], [], []>} : vector<1x128xf32>, vector<128x96xf32>, vector<1x96xf32> -> vector<1x96xf32>
    %c1_11 = arith.constant 1 : index
    %c0_12 = arith.constant 0 : index
    %9 = vector.load %arg17[%c1_11, %c0_12] : memref<8x96xf32, #tpu.memory_space<vmem>>, vector<1x96xf32>
    tpu.vector_store %arg17[%c1_11, %c0_12], %8 {strides = array<i32>} : memref<8x96xf32, #tpu.memory_space<vmem>>, vector<1x96xf32>,
    %c2 = arith.constant 2 : index
    %c0_13 = arith.constant 0 : index
    %10 = vector.load %arg0[%c2, %c0_13] : memref<8x128xf32, #tpu.memory_space<vmem>>, vector<1x128xf32>
    %c2_14 = arith.constant 2 : index
    %c0_15 = arith.constant 0 : index
    %c0_16 = arith.constant 0 : index
    %11 = vector.load %arg4[%c2_14, %c0_15, %c0_16] : memref<8x128x96xf32, #tpu.memory_space<vmem>>, vector<1x128x96xf32>
    %12 = vector.shape_cast %11 : vector<1x128x96xf32> to vector<128x96xf32>
    %cst_17 = arith.constant dense<0.000000e+00> : vector<1x96xf32>
    %13 = tpu.matmul %10, %12, %cst_17 {dimension_numbers = #tpu.dot_dimension_numbers<[1], [0], [0], [1], [0, 0, 1, 1], [], []>} : vector<1x128xf32>, vector<128x96xf32>, vector<1x96xf32> -> vector<1x96xf32>
    %c2_18 = arith.constant 2 : index
    %c0_19 = arith.constant 0 : index
    %14 = vector.load %arg17[%c2_18, %c0_19] : memref<8x96xf32, #tpu.memory_space<vmem>>, vector<1x96xf32>
    tpu.vector_store %arg17[%c2_18, %c0_19], %13 {strides = array<i32>} : memref<8x96xf32, #tpu.memory_space<vmem>>, vector<1x96xf32>,
    %c3 = arith.constant 3 : index
    %c0_20 = arith.constant 0 : index
    %15 = vector.load %arg0[%c3, %c0_20] : memref<8x128xf32, #tpu.memory_space<vmem>>, vector<1x128xf32>
    %c3_21 = arith.constant 3 : index
    %c0_22 = arith.constant 0 : index
    %c0_23 = arith.constant 0 : index
    %16 = vector.load %arg4[%c3_21, %c0_22, %c0_23] : memref<8x128x96xf32, #tpu.memory_space<vmem>>, vector<1x128x96xf32>
    %17 = vector.shape_cast %16 : vector<1x128x96xf32> to vector<128x96xf32>
    %cst_24 = arith.constant dense<0.000000e+00> : vector<1x96xf32>
    %18 = tpu.matmul %15, %17, %cst_24 {dimension_numbers = #tpu.dot_dimension_numbers<[1], [0], [0], [1], [0, 0, 1, 1], [], []>} : vector<1x128xf32>, vector<128x96xf32>, vector<1x96xf32> -> vector<1x96xf32>
    %c3_25 = arith.constant 3 : index
    %c0_26 = arith.constant 0 : index
    %19 = vector.load %arg17[%c3_25, %c0_26] : memref<8x96xf32, #tpu.memory_space<vmem>>, vector<1x96xf32>
    tpu.vector_store %arg17[%c3_25, %c0_26], %18 {strides = array<i32>} : memref<8x96xf32, #tpu.memory_space<vmem>>, vector<1x96xf32>,
    %c4 = arith.constant 4 : index
    %c0_27 = arith.constant 0 : index
    %20 = vector.load %arg0[%c4, %c0_27] : memref<8x128xf32, #tpu.memory_space<vmem>>, vector<1x128xf32>
    %c4_28 = arith.constant 4 : index
    %c0_29 = arith.constant 0 : index
    %c0_30 = arith.constant 0 : index
    %21 = vector.load %arg4[%c4_28, %c0_29, %c0_30] : memref<8x128x96xf32, #tpu.memory_space<vmem>>, vector<1x128x96xf32>
    %22 = vector.shape_cast %21 : vector<1x128x96xf32> to vector<128x96xf32>
    %cst_31 = arith.constant dense<0.000000e+00> : vector<1x96xf32>
    %23 = tpu.matmul %20, %22, %cst_31 {dimension_numbers = #tpu.dot_dimension_numbers<[1], [0], [0], [1], [0, 0, 1, 1], [], []>} : vector<1x128xf32>, vector<128x96xf32>, vector<1x96xf32> -> vector<1x96xf32>
    %c4_32 = arith.constant 4 : index
    %c0_33 = arith.constant 0 : index
    %24 = vector.load %arg17[%c4_32, %c0_33] : memref<8x96xf32, #tpu.memory_space<vmem>>, vector<1x96xf32>
    tpu.vector_store %arg17[%c4_32, %c0_33], %23 {strides = array<i32>} : memref<8x96xf32, #tpu.memory_space<vmem>>, vector<1x96xf32>,
    %c5 = arith.constant 5 : index
    %c0_34 = arith.constant 0 : index
    %25 = vector.load %arg0[%c5, %c0_34] : memref<8x128xf32, #tpu.memory_space<vmem>>, vector<1x128xf32>
    %c5_35 = arith.constant 5 : index
    %c0_36 = arith.constant 0 : index
    %c0_37 = arith.constant 0 : index
    %26 = vector.load %arg4[%c5_35, %c0_36, %c0_37] : memref<8x128x96xf32, #tpu.memory_space<vmem>>, vector<1x128x96xf32>
    %27 = vector.shape_cast %26 : vector<1x128x96xf32> to vector<128x96xf32>
    %cst_38 = arith.constant dense<0.000000e+00> : vector<1x96xf32>
    %28 = tpu.matmul %25, %27, %cst_38 {dimension_numbers = #tpu.dot_dimension_numbers<[1], [0], [0], [1], [0, 0, 1, 1], [], []>} : vector<1x128xf32>, vector<128x96xf32>, vector<1x96xf32> -> vector<1x96xf32>
    %c5_39 = arith.constant 5 : index
    %c0_40 = arith.constant 0 : index
    %29 = vector.load %arg17[%c5_39, %c0_40] : memref<8x96xf32, #tpu.memory_space<vmem>>, vector<1x96xf32>
    tpu.vector_store %arg17[%c5_39, %c0_40], %28 {strides = array<i32>} : memref<8x96xf32, #tpu.memory_space<vmem>>, vector<1x96xf32>,
    %c6 = arith.constant 6 : index
    %c0_41 = arith.constant 0 : index
    %30 = vector.load %arg0[%c6, %c0_41] : memref<8x128xf32, #tpu.memory_space<vmem>>, vector<1x128xf32>
    %c6_42 = arith.constant 6 : index
    %c0_43 = arith.constant 0 : index
    %c0_44 = arith.constant 0 : index
    %31 = vector.load %arg4[%c6_42, %c0_43, %c0_44] : memref<8x128x96xf32, #tpu.memory_space<vmem>>, vector<1x128x96xf32>
    %32 = vector.shape_cast %31 : vector<1x128x96xf32> to vector<128x96xf32>
    %cst_45 = arith.constant dense<0.000000e+00> : vector<1x96xf32>
    %33 = tpu.matmul %30, %32, %cst_45 {dimension_numbers = #tpu.dot_dimension_numbers<[1], [0], [0], [1], [0, 0, 1, 1], [], []>} : vector<1x128xf32>, vector<128x96xf32>, vector<1x96xf32> -> vector<1x96xf32>
    %c6_46 = arith.constant 6 : index
    %c0_47 = arith.constant 0 : index
    %34 = vector.load %arg17[%c6_46, %c0_47] : memref<8x96xf32, #tpu.memory_space<vmem>>, vector<1x96xf32>
    tpu.vector_store %arg17[%c6_46, %c0_47], %33 {strides = array<i32>} : memref<8x96xf32, #tpu.memory_space<vmem>>, vector<1x96xf32>,
    %c7 = arith.constant 7 : index
    %c0_48 = arith.constant 0 : index
    %35 = vector.load %arg0[%c7, %c0_48] : memref<8x128xf32, #tpu.memory_space<vmem>>, vector<1x128xf32>
    %c7_49 = arith.constant 7 : index
    %c0_50 = arith.constant 0 : index
    %c0_51 = arith.constant 0 : index
    %36 = vector.load %arg4[%c7_49, %c0_50, %c0_51] : memref<8x128x96xf32, #tpu.memory_space<vmem>>, vector<1x128x96xf32>
    %37 = vector.shape_cast %36 : vector<1x128x96xf32> to vector<128x96xf32>
    %cst_52 = arith.constant dense<0.000000e+00> : vector<1x96xf32>
    %38 = tpu.matmul %35, %37, %cst_52 {dimension_numbers = #tpu.dot_dimension_numbers<[1], [0], [0], [1], [0, 0, 1, 1], [], []>} : vector<1x128xf32>, vector<128x96xf32>, vector<1x96xf32> -> vector<1x96xf32>
    %c7_53 = arith.constant 7 : index
    %c0_54 = arith.constant 0 : index
    %39 = vector.load %arg17[%c7_53, %c0_54] : memref<8x96xf32, #tpu.memory_space<vmem>>, vector<1x96xf32>
    tpu.vector_store %arg17[%c7_53, %c0_54], %38 {strides = array<i32>} : memref<8x96xf32, #tpu.memory_space<vmem>>, vector<1x96xf32>,
    %c0_55 = arith.constant 0 : index
    %c0_56 = arith.constant 0 : index
    %40 = vector.load %arg17[%c0_55, %c0_56] : memref<8x96xf32, #tpu.memory_space<vmem>>, vector<8x96xf32>
    %c0_57 = arith.constant 0 : index
    %c0_58 = arith.constant 0 : index
    %41 = vector.load %arg5[%c0_57, %c0_58] : memref<8x96xf32, #tpu.memory_space<vmem>>, vector<8x96xf32>
    %42 = arith.addf %40, %41 : vector<8x96xf32>
    %cst_59 = arith.constant 0.000000e+00 : f32
    %43 = vector.broadcast %cst_59 : f32 to vector<8x96xf32>
    %44 = arith.maximumf %42, %43 : vector<8x96xf32>
    %c0_60 = arith.constant 0 : index
    %c0_61 = arith.constant 0 : index
    %45 = vector.load %arg6[%c0_60, %c0_61] : memref<96x96xf32, #tpu.memory_space<vmem>>, vector<96x96xf32>
    %cst_62 = arith.constant dense<0.000000e+00> : vector<8x96xf32>
    %46 = tpu.matmul %44, %45, %cst_62 {dimension_numbers = #tpu.dot_dimension_numbers<[1], [0], [0], [1], [0, 0, 1, 1], [], []>} : vector<8x96xf32>, vector<96x96xf32>, vector<8x96xf32> -> vector<8x96xf32>
    %c0_63 = arith.constant 0 : index
    %c0_64 = arith.constant 0 : index
    %47 = vector.load %arg7[%c0_63, %c0_64] : memref<96x1xf32, #tpu.memory_space<vmem>>, vector<96x1xf32>
    %cst_65 = arith.constant dense<0.000000e+00> : vector<8x1xf32>
    %48 = tpu.matmul %44, %47, %cst_65 {dimension_numbers = #tpu.dot_dimension_numbers<[1], [0], [0], [1], [0, 0, 1, 1], [], []>} : vector<8x96xf32>, vector<96x1xf32>, vector<8x1xf32> -> vector<8x1xf32>
    %c0_66 = arith.constant 0 : index
    %c0_67 = arith.constant 0 : index
    %49 = vector.load %arg8[%c0_66, %c0_67] : memref<1x96xf32, #tpu.memory_space<vmem>>, vector<1x96xf32>
    %cst_68 = arith.constant dense<0.000000e+00> : vector<1x8xf32>
    %50 = tpu.matmul %49, %44, %cst_68 {dimension_numbers = #tpu.dot_dimension_numbers<[1], [1], [0], [0], [0, 0, 1, 0], [], []>} : vector<1x96xf32>, vector<8x96xf32>, vector<1x8xf32> -> vector<1x8xf32>
    %51 = vector.broadcast %48 : vector<8x1xf32> to vector<8x8xf32>
    %52 = vector.broadcast %50 : vector<1x8xf32> to vector<8x8xf32>
    %53 = arith.addf %51, %52 : vector<8x8xf32>
    %cst_69 = arith.constant 0.000000e+00 : f32
    %54 = vector.broadcast %cst_69 : f32 to vector<8x8xf32>
    %55 = arith.cmpf ogt, %53, %54 : vector<8x8xf32>
    %cst_70 = arith.constant 2.000000e-01 : f32
    %56 = vector.broadcast %cst_70 : f32 to vector<8x8xf32>
    %57 = arith.mulf %56, %53 : vector<8x8xf32>
    %58 = arith.select %55, %53, %57 : vector<8x8xi1>, vector<8x8xf32>
    %c0_71 = arith.constant 0 : index
    %c0_72 = arith.constant 0 : index
    %59 = vector.load %arg9[%c0_71, %c0_72] : memref<8x8xf32, #tpu.memory_space<vmem>>, vector<8x8xf32>
    %cst_73 = arith.constant 0.000000e+00 : f32
    %60 = vector.broadcast %cst_73 : f32 to vector<8x8xf32>
    %61 = arith.cmpf ogt, %59, %60 : vector<8x8xf32>
    %cst_74 = arith.constant -9.000000e+15 : f32
    %62 = vector.broadcast %cst_74 : f32 to vector<8x8xf32>
    %63 = arith.select %61, %58, %62 : vector<8x8xi1>, vector<8x8xf32>
    %cst_75 = arith.constant dense<0xFF800000> : vector<8xf32>
    %64 = vector.multi_reduction <maximumf>, %63, %cst_75 [1] : vector<8x8xf32> to vector<8xf32>
    %65 = vector.shape_cast %64 : vector<8xf32> to vector<8x1xf32>
    %66 = vector.broadcast %65 : vector<8x1xf32> to vector<8x8xf32>
    %67 = arith.subf %63, %66 : vector<8x8xf32>
    %68 = math.exp %67 : vector<8x8xf32>
    %cst_76 = arith.constant dense<0.000000e+00> : vector<8xf32>
    %69 = vector.multi_reduction <add>, %68, %cst_76 [1] : vector<8x8xf32> to vector<8xf32>
    %70 = vector.shape_cast %69 : vector<8xf32> to vector<8x1xf32>
    %71 = tpu.reciprocal %70 {approx = true} : vector<8x1xf32> -> vector<8x1xf32>
    %72 = vector.broadcast %71 : vector<8x1xf32> to vector<8x8xf32>
    %73 = arith.mulf %68, %72 : vector<8x8xf32>
    %cst_77 = arith.constant dense<0.000000e+00> : vector<8x96xf32>
    %74 = tpu.matmul %73, %46, %cst_77 {dimension_numbers = #tpu.dot_dimension_numbers<[1], [0], [0], [1], [0, 0, 1, 1], [], []>} : vector<8x8xf32>, vector<8x96xf32>, vector<8x96xf32> -> vector<8x96xf32>
    %cst_78 = arith.constant 0.000000e+00 : f32
    %75 = vector.broadcast %cst_78 : f32 to vector<8x96xf32>
    %76 = arith.cmpf ogt, %74, %75 : vector<8x96xf32>
    %cst_79 = arith.constant 0.000000e+00 : f32
    %77 = vector.broadcast %cst_79 : f32 to vector<8x96xf32>
    %78 = arith.minimumf %74, %77 : vector<8x96xf32>
    %79 = math.exp %78 : vector<8x96xf32>
    %cst_80 = arith.constant 1.000000e+00 : f32
    %80 = vector.broadcast %cst_80 : f32 to vector<8x96xf32>
    %81 = arith.subf %79, %80 : vector<8x96xf32>
    %82 = arith.select %76, %74, %81 : vector<8x96xi1>, vector<8x96xf32>
    %c0_81 = arith.constant 0 : index
    %c0_82 = arith.constant 0 : index
    %83 = vector.load %arg1[%c0_81, %c0_82] : memref<8x1xf32, #tpu.memory_space<vmem>>, vector<8x1xf32>
    %cst_83 = arith.constant 1.000000e+00 : f32
    %84 = vector.broadcast %cst_83 : f32 to vector<8x1xf32>
    %85 = arith.subf %84, %83 : vector<8x1xf32>
    %c0_84 = arith.constant 0 : index
    %c0_85 = arith.constant 0 : index
    %86 = vector.load %arg2[%c0_84, %c0_85] : memref<8x32xf32, #tpu.memory_space<vmem>>, vector<8x32xf32>
    %87 = vector.broadcast %85 : vector<8x1xf32> to vector<8x32xf32>
    %88 = arith.mulf %86, %87 : vector<8x32xf32>
    %c0_86 = arith.constant 0 : index
    %c0_87 = arith.constant 0 : index
    %89 = vector.load %arg3[%c0_86, %c0_87] : memref<8x32xf32, #tpu.memory_space<vmem>>, vector<8x32xf32>
    %90 = vector.broadcast %85 : vector<8x1xf32> to vector<8x32xf32>
    %91 = arith.mulf %89, %90 : vector<8x32xf32>
    %92 = tpu.concatenate %82, %88 in 1 : vector<8x96xf32>, vector<8x32xf32> -> vector<8x128xf32>
    %93 = vector.extract_strided_slice %92 {offsets = [0, 0], sizes = [1, 128], strides = [1, 1]} : vector<8x128xf32> to vector<1x128xf32>
    %c0_88 = arith.constant 0 : index
    %c0_89 = arith.constant 0 : index
    %c0_90 = arith.constant 0 : index
    %94 = vector.load %arg10[%c0_88, %c0_89, %c0_90] : memref<8x128x128xf32, #tpu.memory_space<vmem>>, vector<1x128x128xf32>
    %95 = vector.shape_cast %94 : vector<1x128x128xf32> to vector<128x128xf32>
    %cst_91 = arith.constant dense<0.000000e+00> : vector<1x128xf32>
    %96 = tpu.matmul %93, %95, %cst_91 {dimension_numbers = #tpu.dot_dimension_numbers<[1], [0], [0], [1], [0, 0, 1, 1], [], []>} : vector<1x128xf32>, vector<128x128xf32>, vector<1x128xf32> -> vector<1x128xf32>
    %c0_92 = arith.constant 0 : index
    %c0_93 = arith.constant 0 : index
    %97 = vector.load %arg18[%c0_92, %c0_93] : memref<8x128xf32, #tpu.memory_space<vmem>>, vector<1x128xf32>
    tpu.vector_store %arg18[%c0_92, %c0_93], %96 {strides = array<i32>} : memref<8x128xf32, #tpu.memory_space<vmem>>, vector<1x128xf32>,
    %98 = vector.extract_strided_slice %92 {offsets = [1, 0], sizes = [1, 128], strides = [1, 1]} : vector<8x128xf32> to vector<1x128xf32>
    %c1_94 = arith.constant 1 : index
    %c0_95 = arith.constant 0 : index
    %c0_96 = arith.constant 0 : index
    %99 = vector.load %arg10[%c1_94, %c0_95, %c0_96] : memref<8x128x128xf32, #tpu.memory_space<vmem>>, vector<1x128x128xf32>
    %100 = vector.shape_cast %99 : vector<1x128x128xf32> to vector<128x128xf32>
    %cst_97 = arith.constant dense<0.000000e+00> : vector<1x128xf32>
    %101 = tpu.matmul %98, %100, %cst_97 {dimension_numbers = #tpu.dot_dimension_numbers<[1], [0], [0], [1], [0, 0, 1, 1], [], []>} : vector<1x128xf32>, vector<128x128xf32>, vector<1x128xf32> -> vector<1x128xf32>
    %c1_98 = arith.constant 1 : index
    %c0_99 = arith.constant 0 : index
    %102 = vector.load %arg18[%c1_98, %c0_99] : memref<8x128xf32, #tpu.memory_space<vmem>>, vector<1x128xf32>
    tpu.vector_store %arg18[%c1_98, %c0_99], %101 {strides = array<i32>} : memref<8x128xf32, #tpu.memory_space<vmem>>, vector<1x128xf32>,
    %103 = vector.extract_strided_slice %92 {offsets = [2, 0], sizes = [1, 128], strides = [1, 1]} : vector<8x128xf32> to vector<1x128xf32>
    %c2_100 = arith.constant 2 : index
    %c0_101 = arith.constant 0 : index
    %c0_102 = arith.constant 0 : index
    %104 = vector.load %arg10[%c2_100, %c0_101, %c0_102] : memref<8x128x128xf32, #tpu.memory_space<vmem>>, vector<1x128x128xf32>
    %105 = vector.shape_cast %104 : vector<1x128x128xf32> to vector<128x128xf32>
    %cst_103 = arith.constant dense<0.000000e+00> : vector<1x128xf32>
    %106 = tpu.matmul %103, %105, %cst_103 {dimension_numbers = #tpu.dot_dimension_numbers<[1], [0], [0], [1], [0, 0, 1, 1], [], []>} : vector<1x128xf32>, vector<128x128xf32>, vector<1x128xf32> -> vector<1x128xf32>
    %c2_104 = arith.constant 2 : index
    %c0_105 = arith.constant 0 : index
    %107 = vector.load %arg18[%c2_104, %c0_105] : memref<8x128xf32, #tpu.memory_space<vmem>>, vector<1x128xf32>
    tpu.vector_store %arg18[%c2_104, %c0_105], %106 {strides = array<i32>} : memref<8x128xf32, #tpu.memory_space<vmem>>, vector<1x128xf32>,
    %108 = vector.extract_strided_slice %92 {offsets = [3, 0], sizes = [1, 128], strides = [1, 1]} : vector<8x128xf32> to vector<1x128xf32>
    %c3_106 = arith.constant 3 : index
    %c0_107 = arith.constant 0 : index
    %c0_108 = arith.constant 0 : index
    %109 = vector.load %arg10[%c3_106, %c0_107, %c0_108] : memref<8x128x128xf32, #tpu.memory_space<vmem>>, vector<1x128x128xf32>
    %110 = vector.shape_cast %109 : vector<1x128x128xf32> to vector<128x128xf32>
    %cst_109 = arith.constant dense<0.000000e+00> : vector<1x128xf32>
    %111 = tpu.matmul %108, %110, %cst_109 {dimension_numbers = #tpu.dot_dimension_numbers<[1], [0], [0], [1], [0, 0, 1, 1], [], []>} : vector<1x128xf32>, vector<128x128xf32>, vector<1x128xf32> -> vector<1x128xf32>
    %c3_110 = arith.constant 3 : index
    %c0_111 = arith.constant 0 : index
    %112 = vector.load %arg18[%c3_110, %c0_111] : memref<8x128xf32, #tpu.memory_space<vmem>>, vector<1x128xf32>
    tpu.vector_store %arg18[%c3_110, %c0_111], %111 {strides = array<i32>} : memref<8x128xf32, #tpu.memory_space<vmem>>, vector<1x128xf32>,
    %113 = vector.extract_strided_slice %92 {offsets = [4, 0], sizes = [1, 128], strides = [1, 1]} : vector<8x128xf32> to vector<1x128xf32>
    %c4_112 = arith.constant 4 : index
    %c0_113 = arith.constant 0 : index
    %c0_114 = arith.constant 0 : index
    %114 = vector.load %arg10[%c4_112, %c0_113, %c0_114] : memref<8x128x128xf32, #tpu.memory_space<vmem>>, vector<1x128x128xf32>
    %115 = vector.shape_cast %114 : vector<1x128x128xf32> to vector<128x128xf32>
    %cst_115 = arith.constant dense<0.000000e+00> : vector<1x128xf32>
    %116 = tpu.matmul %113, %115, %cst_115 {dimension_numbers = #tpu.dot_dimension_numbers<[1], [0], [0], [1], [0, 0, 1, 1], [], []>} : vector<1x128xf32>, vector<128x128xf32>, vector<1x128xf32> -> vector<1x128xf32>
    %c4_116 = arith.constant 4 : index
    %c0_117 = arith.constant 0 : index
    %117 = vector.load %arg18[%c4_116, %c0_117] : memref<8x128xf32, #tpu.memory_space<vmem>>, vector<1x128xf32>
    tpu.vector_store %arg18[%c4_116, %c0_117], %116 {strides = array<i32>} : memref<8x128xf32, #tpu.memory_space<vmem>>, vector<1x128xf32>,
    %118 = vector.extract_strided_slice %92 {offsets = [5, 0], sizes = [1, 128], strides = [1, 1]} : vector<8x128xf32> to vector<1x128xf32>
    %c5_118 = arith.constant 5 : index
    %c0_119 = arith.constant 0 : index
    %c0_120 = arith.constant 0 : index
    %119 = vector.load %arg10[%c5_118, %c0_119, %c0_120] : memref<8x128x128xf32, #tpu.memory_space<vmem>>, vector<1x128x128xf32>
    %120 = vector.shape_cast %119 : vector<1x128x128xf32> to vector<128x128xf32>
    %cst_121 = arith.constant dense<0.000000e+00> : vector<1x128xf32>
    %121 = tpu.matmul %118, %120, %cst_121 {dimension_numbers = #tpu.dot_dimension_numbers<[1], [0], [0], [1], [0, 0, 1, 1], [], []>} : vector<1x128xf32>, vector<128x128xf32>, vector<1x128xf32> -> vector<1x128xf32>
    %c5_122 = arith.constant 5 : index
    %c0_123 = arith.constant 0 : index
    %122 = vector.load %arg18[%c5_122, %c0_123] : memref<8x128xf32, #tpu.memory_space<vmem>>, vector<1x128xf32>
    tpu.vector_store %arg18[%c5_122, %c0_123], %121 {strides = array<i32>} : memref<8x128xf32, #tpu.memory_space<vmem>>, vector<1x128xf32>,
    %123 = vector.extract_strided_slice %92 {offsets = [6, 0], sizes = [1, 128], strides = [1, 1]} : vector<8x128xf32> to vector<1x128xf32>
    %c6_124 = arith.constant 6 : index
    %c0_125 = arith.constant 0 : index
    %c0_126 = arith.constant 0 : index
    %124 = vector.load %arg10[%c6_124, %c0_125, %c0_126] : memref<8x128x128xf32, #tpu.memory_space<vmem>>, vector<1x128x128xf32>
    %125 = vector.shape_cast %124 : vector<1x128x128xf32> to vector<128x128xf32>
    %cst_127 = arith.constant dense<0.000000e+00> : vector<1x128xf32>
    %126 = tpu.matmul %123, %125, %cst_127 {dimension_numbers = #tpu.dot_dimension_numbers<[1], [0], [0], [1], [0, 0, 1, 1], [], []>} : vector<1x128xf32>, vector<128x128xf32>, vector<1x128xf32> -> vector<1x128xf32>
    %c6_128 = arith.constant 6 : index
    %c0_129 = arith.constant 0 : index
    %127 = vector.load %arg18[%c6_128, %c0_129] : memref<8x128xf32, #tpu.memory_space<vmem>>, vector<1x128xf32>
    tpu.vector_store %arg18[%c6_128, %c0_129], %126 {strides = array<i32>} : memref<8x128xf32, #tpu.memory_space<vmem>>, vector<1x128xf32>,
    %128 = vector.extract_strided_slice %92 {offsets = [7, 0], sizes = [1, 128], strides = [1, 1]} : vector<8x128xf32> to vector<1x128xf32>
    %c7_130 = arith.constant 7 : index
    %c0_131 = arith.constant 0 : index
    %c0_132 = arith.constant 0 : index
    %129 = vector.load %arg10[%c7_130, %c0_131, %c0_132] : memref<8x128x128xf32, #tpu.memory_space<vmem>>, vector<1x128x128xf32>
    %130 = vector.shape_cast %129 : vector<1x128x128xf32> to vector<128x128xf32>
    %cst_133 = arith.constant dense<0.000000e+00> : vector<1x128xf32>
    %131 = tpu.matmul %128, %130, %cst_133 {dimension_numbers = #tpu.dot_dimension_numbers<[1], [0], [0], [1], [0, 0, 1, 1], [], []>} : vector<1x128xf32>, vector<128x128xf32>, vector<1x128xf32> -> vector<1x128xf32>
    %c7_134 = arith.constant 7 : index
    %c0_135 = arith.constant 0 : index
    %132 = vector.load %arg18[%c7_134, %c0_135] : memref<8x128xf32, #tpu.memory_space<vmem>>, vector<1x128xf32>
    tpu.vector_store %arg18[%c7_134, %c0_135], %131 {strides = array<i32>} : memref<8x128xf32, #tpu.memory_space<vmem>>, vector<1x128xf32>,
    %c0_136 = arith.constant 0 : index
    %c0_137 = arith.constant 0 : index
    %133 = vector.load %arg18[%c0_136, %c0_137] : memref<8x128xf32, #tpu.memory_space<vmem>>, vector<8x128xf32>
    %c0_138 = arith.constant 0 : index
    %c0_139 = arith.constant 0 : index
    %134 = vector.load %arg11[%c0_138, %c0_139] : memref<8x128xf32, #tpu.memory_space<vmem>>, vector<8x128xf32>
    %135 = arith.addf %133, %134 : vector<8x128xf32>
    %136 = vector.extract_strided_slice %135 {offsets = [0, 0], sizes = [8, 32], strides = [1, 1]} : vector<8x128xf32> to vector<8x32xf32>
    %cst_140 = arith.constant 5.000000e-01 : f32
    %137 = vector.broadcast %cst_140 : f32 to vector<8x32xf32>
    %138 = arith.mulf %137, %136 : vector<8x32xf32>
    %139 = math.tanh %138 : vector<8x32xf32>
    %cst_141 = arith.constant 1.000000e+00 : f32
    %140 = vector.broadcast %cst_141 : f32 to vector<8x32xf32>
    %141 = arith.addf %139, %140 : vector<8x32xf32>
    %cst_142 = arith.constant 5.000000e-01 : f32
    %142 = vector.broadcast %cst_142 : f32 to vector<8x32xf32>
    %143 = arith.mulf %142, %141 : vector<8x32xf32>
    %144 = vector.extract_strided_slice %135 {offsets = [0, 32], sizes = [8, 32], strides = [1, 1]} : vector<8x128xf32> to vector<8x32xf32>
    %cst_143 = arith.constant 5.000000e-01 : f32
    %145 = vector.broadcast %cst_143 : f32 to vector<8x32xf32>
    %146 = arith.mulf %145, %144 : vector<8x32xf32>
    %147 = math.tanh %146 : vector<8x32xf32>
    %cst_144 = arith.constant 1.000000e+00 : f32
    %148 = vector.broadcast %cst_144 : f32 to vector<8x32xf32>
    %149 = arith.addf %147, %148 : vector<8x32xf32>
    %cst_145 = arith.constant 5.000000e-01 : f32
    %150 = vector.broadcast %cst_145 : f32 to vector<8x32xf32>
    %151 = arith.mulf %150, %149 : vector<8x32xf32>
    %152 = vector.extract_strided_slice %135 {offsets = [0, 64], sizes = [8, 32], strides = [1, 1]} : vector<8x128xf32> to vector<8x32xf32>
    %153 = math.tanh %152 : vector<8x32xf32>
    %154 = vector.extract_strided_slice %135 {offsets = [0, 96], sizes = [8, 32], strides = [1, 1]} : vector<8x128xf32> to vector<8x32xf32>
    %cst_146 = arith.constant 5.000000e-01 : f32
    %155 = vector.broadcast %cst_146 : f32 to vector<8x32xf32>
    %156 = arith.mulf %155, %154 : vector<8x32xf32>
    %157 = math.tanh %156 : vector<8x32xf32>
    %cst_147 = arith.constant 1.000000e+00 : f32
    %158 = vector.broadcast %cst_147 : f32 to vector<8x32xf32>
    %159 = arith.addf %157, %158 : vector<8x32xf32>
    %cst_148 = arith.constant 5.000000e-01 : f32
    %160 = vector.broadcast %cst_148 : f32 to vector<8x32xf32>
    %161 = arith.mulf %160, %159 : vector<8x32xf32>
    %162 = arith.mulf %151, %91 : vector<8x32xf32>
    %163 = arith.mulf %143, %153 : vector<8x32xf32>
    %164 = arith.addf %162, %163 : vector<8x32xf32>
    %165 = math.tanh %164 : vector<8x32xf32>
    %166 = arith.mulf %161, %165 : vector<8x32xf32>
    %167 = vector.extract_strided_slice %166 {offsets = [0, 0], sizes = [1, 32], strides = [1, 1]} : vector<8x32xf32> to vector<1x32xf32>
    %c0_149 = arith.constant 0 : index
    %c0_150 = arith.constant 0 : index
    %c0_151 = arith.constant 0 : index
    %168 = vector.load %arg12[%c0_149, %c0_150, %c0_151] : memref<8x32x8xf32, #tpu.memory_space<vmem>>, vector<1x32x8xf32>
    %169 = vector.shape_cast %168 : vector<1x32x8xf32> to vector<32x8xf32>
    %cst_152 = arith.constant dense<0.000000e+00> : vector<1x8xf32>
    %170 = tpu.matmul %167, %169, %cst_152 {dimension_numbers = #tpu.dot_dimension_numbers<[1], [0], [0], [1], [0, 0, 1, 1], [], []>} : vector<1x32xf32>, vector<32x8xf32>, vector<1x8xf32> -> vector<1x8xf32>
    %c0_153 = arith.constant 0 : index
    %c0_154 = arith.constant 0 : index
    %171 = vector.load %arg19[%c0_153, %c0_154] : memref<8x8xf32, #tpu.memory_space<vmem>>, vector<1x8xf32>
    tpu.vector_store %arg19[%c0_153, %c0_154], %170 {strides = array<i32>} : memref<8x8xf32, #tpu.memory_space<vmem>>, vector<1x8xf32>,
    %172 = vector.extract_strided_slice %166 {offsets = [1, 0], sizes = [1, 32], strides = [1, 1]} : vector<8x32xf32> to vector<1x32xf32>
    %c1_155 = arith.constant 1 : index
    %c0_156 = arith.constant 0 : index
    %c0_157 = arith.constant 0 : index
    %173 = vector.load %arg12[%c1_155, %c0_156, %c0_157] : memref<8x32x8xf32, #tpu.memory_space<vmem>>, vector<1x32x8xf32>
    %174 = vector.shape_cast %173 : vector<1x32x8xf32> to vector<32x8xf32>
    %cst_158 = arith.constant dense<0.000000e+00> : vector<1x8xf32>
    %175 = tpu.matmul %172, %174, %cst_158 {dimension_numbers = #tpu.dot_dimension_numbers<[1], [0], [0], [1], [0, 0, 1, 1], [], []>} : vector<1x32xf32>, vector<32x8xf32>, vector<1x8xf32> -> vector<1x8xf32>
    %c1_159 = arith.constant 1 : index
    %c0_160 = arith.constant 0 : index
    %176 = vector.load %arg19[%c1_159, %c0_160] : memref<8x8xf32, #tpu.memory_space<vmem>>, vector<1x8xf32>
    tpu.vector_store %arg19[%c1_159, %c0_160], %175 {strides = array<i32>} : memref<8x8xf32, #tpu.memory_space<vmem>>, vector<1x8xf32>,
    %177 = vector.extract_strided_slice %166 {offsets = [2, 0], sizes = [1, 32], strides = [1, 1]} : vector<8x32xf32> to vector<1x32xf32>
    %c2_161 = arith.constant 2 : index
    %c0_162 = arith.constant 0 : index
    %c0_163 = arith.constant 0 : index
    %178 = vector.load %arg12[%c2_161, %c0_162, %c0_163] : memref<8x32x8xf32, #tpu.memory_space<vmem>>, vector<1x32x8xf32>
    %179 = vector.shape_cast %178 : vector<1x32x8xf32> to vector<32x8xf32>
    %cst_164 = arith.constant dense<0.000000e+00> : vector<1x8xf32>
    %180 = tpu.matmul %177, %179, %cst_164 {dimension_numbers = #tpu.dot_dimension_numbers<[1], [0], [0], [1], [0, 0, 1, 1], [], []>} : vector<1x32xf32>, vector<32x8xf32>, vector<1x8xf32> -> vector<1x8xf32>
    %c2_165 = arith.constant 2 : index
    %c0_166 = arith.constant 0 : index
    %181 = vector.load %arg19[%c2_165, %c0_166] : memref<8x8xf32, #tpu.memory_space<vmem>>, vector<1x8xf32>
    tpu.vector_store %arg19[%c2_165, %c0_166], %180 {strides = array<i32>} : memref<8x8xf32, #tpu.memory_space<vmem>>, vector<1x8xf32>,
    %182 = vector.extract_strided_slice %166 {offsets = [3, 0], sizes = [1, 32], strides = [1, 1]} : vector<8x32xf32> to vector<1x32xf32>
    %c3_167 = arith.constant 3 : index
    %c0_168 = arith.constant 0 : index
    %c0_169 = arith.constant 0 : index
    %183 = vector.load %arg12[%c3_167, %c0_168, %c0_169] : memref<8x32x8xf32, #tpu.memory_space<vmem>>, vector<1x32x8xf32>
    %184 = vector.shape_cast %183 : vector<1x32x8xf32> to vector<32x8xf32>
    %cst_170 = arith.constant dense<0.000000e+00> : vector<1x8xf32>
    %185 = tpu.matmul %182, %184, %cst_170 {dimension_numbers = #tpu.dot_dimension_numbers<[1], [0], [0], [1], [0, 0, 1, 1], [], []>} : vector<1x32xf32>, vector<32x8xf32>, vector<1x8xf32> -> vector<1x8xf32>
    %c3_171 = arith.constant 3 : index
    %c0_172 = arith.constant 0 : index
    %186 = vector.load %arg19[%c3_171, %c0_172] : memref<8x8xf32, #tpu.memory_space<vmem>>, vector<1x8xf32>
    tpu.vector_store %arg19[%c3_171, %c0_172], %185 {strides = array<i32>} : memref<8x8xf32, #tpu.memory_space<vmem>>, vector<1x8xf32>,
    %187 = vector.extract_strided_slice %166 {offsets = [4, 0], sizes = [1, 32], strides = [1, 1]} : vector<8x32xf32> to vector<1x32xf32>
    %c4_173 = arith.constant 4 : index
    %c0_174 = arith.constant 0 : index
    %c0_175 = arith.constant 0 : index
    %188 = vector.load %arg12[%c4_173, %c0_174, %c0_175] : memref<8x32x8xf32, #tpu.memory_space<vmem>>, vector<1x32x8xf32>
    %189 = vector.shape_cast %188 : vector<1x32x8xf32> to vector<32x8xf32>
    %cst_176 = arith.constant dense<0.000000e+00> : vector<1x8xf32>
    %190 = tpu.matmul %187, %189, %cst_176 {dimension_numbers = #tpu.dot_dimension_numbers<[1], [0], [0], [1], [0, 0, 1, 1], [], []>} : vector<1x32xf32>, vector<32x8xf32>, vector<1x8xf32> -> vector<1x8xf32>
    %c4_177 = arith.constant 4 : index
    %c0_178 = arith.constant 0 : index
    %191 = vector.load %arg19[%c4_177, %c0_178] : memref<8x8xf32, #tpu.memory_space<vmem>>, vector<1x8xf32>
    tpu.vector_store %arg19[%c4_177, %c0_178], %190 {strides = array<i32>} : memref<8x8xf32, #tpu.memory_space<vmem>>, vector<1x8xf32>,
    %192 = vector.extract_strided_slice %166 {offsets = [5, 0], sizes = [1, 32], strides = [1, 1]} : vector<8x32xf32> to vector<1x32xf32>
    %c5_179 = arith.constant 5 : index
    %c0_180 = arith.constant 0 : index
    %c0_181 = arith.constant 0 : index
    %193 = vector.load %arg12[%c5_179, %c0_180, %c0_181] : memref<8x32x8xf32, #tpu.memory_space<vmem>>, vector<1x32x8xf32>
    %194 = vector.shape_cast %193 : vector<1x32x8xf32> to vector<32x8xf32>
    %cst_182 = arith.constant dense<0.000000e+00> : vector<1x8xf32>
    %195 = tpu.matmul %192, %194, %cst_182 {dimension_numbers = #tpu.dot_dimension_numbers<[1], [0], [0], [1], [0, 0, 1, 1], [], []>} : vector<1x32xf32>, vector<32x8xf32>, vector<1x8xf32> -> vector<1x8xf32>
    %c5_183 = arith.constant 5 : index
    %c0_184 = arith.constant 0 : index
    %196 = vector.load %arg19[%c5_183, %c0_184] : memref<8x8xf32, #tpu.memory_space<vmem>>, vector<1x8xf32>
    tpu.vector_store %arg19[%c5_183, %c0_184], %195 {strides = array<i32>} : memref<8x8xf32, #tpu.memory_space<vmem>>, vector<1x8xf32>,
    %197 = vector.extract_strided_slice %166 {offsets = [6, 0], sizes = [1, 32], strides = [1, 1]} : vector<8x32xf32> to vector<1x32xf32>
    %c6_185 = arith.constant 6 : index
    %c0_186 = arith.constant 0 : index
    %c0_187 = arith.constant 0 : index
    %198 = vector.load %arg12[%c6_185, %c0_186, %c0_187] : memref<8x32x8xf32, #tpu.memory_space<vmem>>, vector<1x32x8xf32>
    %199 = vector.shape_cast %198 : vector<1x32x8xf32> to vector<32x8xf32>
    %cst_188 = arith.constant dense<0.000000e+00> : vector<1x8xf32>
    %200 = tpu.matmul %197, %199, %cst_188 {dimension_numbers = #tpu.dot_dimension_numbers<[1], [0], [0], [1], [0, 0, 1, 1], [], []>} : vector<1x32xf32>, vector<32x8xf32>, vector<1x8xf32> -> vector<1x8xf32>
    %c6_189 = arith.constant 6 : index
    %c0_190 = arith.constant 0 : index
    %201 = vector.load %arg19[%c6_189, %c0_190] : memref<8x8xf32, #tpu.memory_space<vmem>>, vector<1x8xf32>
    tpu.vector_store %arg19[%c6_189, %c0_190], %200 {strides = array<i32>} : memref<8x8xf32, #tpu.memory_space<vmem>>, vector<1x8xf32>,
    %202 = vector.extract_strided_slice %166 {offsets = [7, 0], sizes = [1, 32], strides = [1, 1]} : vector<8x32xf32> to vector<1x32xf32>
    %c7_191 = arith.constant 7 : index
    %c0_192 = arith.constant 0 : index
    %c0_193 = arith.constant 0 : index
    %203 = vector.load %arg12[%c7_191, %c0_192, %c0_193] : memref<8x32x8xf32, #tpu.memory_space<vmem>>, vector<1x32x8xf32>
    %204 = vector.shape_cast %203 : vector<1x32x8xf32> to vector<32x8xf32>
    %cst_194 = arith.constant dense<0.000000e+00> : vector<1x8xf32>
    %205 = tpu.matmul %202, %204, %cst_194 {dimension_numbers = #tpu.dot_dimension_numbers<[1], [0], [0], [1], [0, 0, 1, 1], [], []>} : vector<1x32xf32>, vector<32x8xf32>, vector<1x8xf32> -> vector<1x8xf32>
    %c7_195 = arith.constant 7 : index
    %c0_196 = arith.constant 0 : index
    %206 = vector.load %arg19[%c7_195, %c0_196] : memref<8x8xf32, #tpu.memory_space<vmem>>, vector<1x8xf32>
    tpu.vector_store %arg19[%c7_195, %c0_196], %205 {strides = array<i32>} : memref<8x8xf32, #tpu.memory_space<vmem>>, vector<1x8xf32>,
    %c0_197 = arith.constant 0 : index
    %c0_198 = arith.constant 0 : index
    %207 = vector.load %arg19[%c0_197, %c0_198] : memref<8x8xf32, #tpu.memory_space<vmem>>, vector<8x8xf32>
    %c0_199 = arith.constant 0 : index
    %c0_200 = arith.constant 0 : index
    %208 = vector.load %arg13[%c0_199, %c0_200] : memref<8x8xf32, #tpu.memory_space<vmem>>, vector<8x8xf32>
    %209 = arith.addf %207, %208 : vector<8x8xf32>
    %cst_201 = arith.constant dense<0xFF800000> : vector<8xf32>
    %210 = vector.multi_reduction <maximumf>, %209, %cst_201 [1] : vector<8x8xf32> to vector<8xf32>
    %211 = vector.shape_cast %210 : vector<8xf32> to vector<8x1xf32>
    %212 = vector.broadcast %211 : vector<8x1xf32> to vector<8x8xf32>
    %213 = arith.subf %209, %212 : vector<8x8xf32>
    %214 = math.exp %213 : vector<8x8xf32>
    %cst_202 = arith.constant dense<0.000000e+00> : vector<8xf32>
    %215 = vector.multi_reduction <add>, %214, %cst_202 [1] : vector<8x8xf32> to vector<8xf32>
    %216 = vector.shape_cast %215 : vector<8xf32> to vector<8x1xf32>
    %217 = tpu.reciprocal %216 {approx = true} : vector<8x1xf32> -> vector<8x1xf32>
    %218 = vector.broadcast %217 : vector<8x1xf32> to vector<8x8xf32>
    %219 = arith.mulf %214, %218 : vector<8x8xf32>
    %c0_203 = arith.constant 0 : index
    %c0_204 = arith.constant 0 : index
    %220 = vector.load %arg14[%c0_203, %c0_204] : memref<8x8xf32, #tpu.memory_space<vmem>>, vector<8x8xf32>
    tpu.vector_store %arg14[%c0_203, %c0_204], %219 {strides = array<i32>} : memref<8x8xf32, #tpu.memory_space<vmem>>, vector<8x8xf32>,
    %c0_205 = arith.constant 0 : index
    %c0_206 = arith.constant 0 : index
    %221 = vector.load %arg15[%c0_205, %c0_206] : memref<8x32xf32, #tpu.memory_space<vmem>>, vector<8x32xf32>
    tpu.vector_store %arg15[%c0_205, %c0_206], %166 {strides = array<i32>} : memref<8x32xf32, #tpu.memory_space<vmem>>, vector<8x32xf32>,
    %c0_207 = arith.constant 0 : index
    %c0_208 = arith.constant 0 : index
    %222 = vector.load %arg16[%c0_207, %c0_208] : memref<8x32xf32, #tpu.memory_space<vmem>>, vector<8x32xf32>
    tpu.vector_store %arg16[%c0_207, %c0_208], %164 {strides = array<i32>} : memref<8x32xf32, #tpu.memory_space<vmem>>, vector<8x32xf32>,
    return
  }
}

</mosaic_0001>

<bundles_post_ra>
// kernel: tpu_custom_call.1
= control target key start
LH: loop header
LB: loop body
LE: loop exit
PB: predicated region body
PF: predicated region fallthrough
CT: control target
= control target key end

     0   :  { %s5874_s0 = inlined_call_operand.vmem [shape: f32[8,128], index: 0, kind: input, shape index: {}]   ;;  %s5875_s1 = inlined_call_operand.vmem [shape: f32[8,1], index: 1, kind: input, shape index: {}]   ;;  %s5876_s2 = inlined_call_operand.vmem [shape: f32[8,32], index: 2, kind: input, shape index: {}]   ;;  %s5877_s3 = inlined_call_operand.vmem [shape: f32[8,32], index: 3, kind: input, shape index: {}]   ;;  %s5878_s4 = inlined_call_operand.vmem [shape: f32[8,128,96], index: 4, kind: input, shape index: {}]   ;;  %s5879_s5 = inlined_call_operand.vmem [shape: f32[8,96], index: 5, kind: input, shape index: {}]   ;;  %s5880_s6 = inlined_call_operand.vmem [shape: f32[96,96], index: 6, kind: input, shape index: {}]   ;;  %s5881_s7 = inlined_call_operand.vmem [shape: f32[96,1], index: 7, kind: input, shape index: {}]   ;;  %s5882_s8 = inlined_call_operand.vmem [shape: f32[1,96], index: 8, kind: input, shape index: {}]   ;;  %s5883_s9 = inlined_call_operand.vmem [shape: f32[8,8], index: 9, kind: input, shape index: {}]   ;;  %s5884_s10 = inlined_call_operand.vmem [shape: f32[8,128,128], index: 10, kind: input, shape index: {}]   ;;  %s5885_s11 = inlined_call_operand.vmem [shape: f32[8,128], index: 11, kind: input, shape index: {}]   ;;  %s5886_s12 = inlined_call_operand.vmem [shape: f32[8,32,8], index: 12, kind: input, shape index: {}]   ;;  %s5887_s13 = inlined_call_operand.vmem [shape: f32[8,8], index: 13, kind: input, shape index: {}]   ;;  %s5888_s14 = inlined_call_operand.hbm [shape: f32[8,8], index: 14, kind: output, shape index: {0}]   ;;  %s5889_s15 = inlined_call_operand.hbm [shape: f32[8,32], index: 15, kind: output, shape index: {1}]   ;;  %s5890_s16 = inlined_call_operand.hbm [shape: f32[8,32], index: 16, kind: output, shape index: {2}]  }
   0x1   :  { %5892 = sst [smem:[#allocation12_spill]] %s5874_s0 }
   0x2   :  { %22 = vsyncpa [#allocation6], 0  ;;  %v53_v0 = vld [vmem:[%s5878_s4] sm:$0xff]  ;;  %v54_v1 = vld [vmem:[%s5878_s4 + $0x8] sm:$0xff]  ;;  %v4478_v3 = vmov 0.0|0.0   ;;  %vm4479_vm0 = vmmov 0  }
   0x3   :  { %v2592_v2 = vld [vmem:[%s5878_s4 + $0x80] sm:$0xff]  ;;  %3912 = vmatprep.subr.bf16.mxu0 %v4478_v3  ;;  %3936 = vmatprep.subr.bf16.mxu1 %v4478_v3  ;;  %v3913_v4 = vpack.c.bf16 %v54_v1, %v53_v0  ;;  %v2593_v5 = vld [vmem:[%s5878_s4 + $0x88] sm:$0xff]  ;;  %v55_v6 = vld [vmem:[%s5878_s4 + $0x10] sm:$0xff]  ;;  %v4480_v11 = vmov 0.0   ;;  %s5893_s20 = sld [smem:[#allocation12_spill]] }
   0x4   :  { %v56_v7 = vld [vmem:[%s5878_s4 + $0x18] sm:$0xff]  ;;  %v3937_v8 = vpack.c.bf16 %v2593_v5, %v2592_v2  ;;  %v2594_v9 = vld [vmem:[%s5878_s4 + $0x90] sm:$0xff]  ;;  %3232 = vmatprep.mubr.msk.f32.mxu0 %vm4479_vm0, %v4480_v11  ;;  %3267 = vmatprep.mubr.msk.f32.mxu1 %vm4479_vm0, %v4480_v11  ;;  %v57_v14 = vld [vmem:[%s5878_s4 + $0x20] sm:$0xff] }
   0x5   :  { %v2595_v10 = vld [vmem:[%s5878_s4 + $0x98] sm:$0xff]  ;;  %3914 = vmatpush3.bf16.msra.mxu0 %v3913_v4  ;;  %v3916_v12 = vpack.c.bf16 %v56_v7, %v55_v6  ;;  %v58_v15 = vld [vmem:[%s5878_s4 + $0x28] sm:$0xff]  ;;  %v2596_v16 = vld [vmem:[%s5878_s4 + $0xa0] sm:$0xff] }
   0x6   :  { %3938 = vmatpush3.bf16.msra.mxu1 %v3937_v8  ;;  %3915 = vmatprep.subr.bf16.mxu0 %v4478_v3  ;;  %v3940_v13 = vpack.c.bf16 %v2595_v10, %v2594_v9  ;;  %v2597_v17 = vld [vmem:[%s5878_s4 + $0xa8] sm:$0xff]  ;;  %v3919_v18 = vpack.c.bf16 %v58_v15, %v57_v14  ;;  %v59_v20 = vld [vmem:[%s5878_s4 + $0x30] sm:$0xff]  ;;  %v60_v21 = vld [vmem:[%s5878_s4 + $0x38] sm:$0xff] }
   0x7   :  { %3939 = vmatprep.subr.bf16.mxu1 %v4478_v3  ;;  %v3943_v19 = vpack.c.bf16 %v2597_v17, %v2596_v16  ;;  %v2598_v22 = vld [vmem:[%s5878_s4 + $0xb0] sm:$0xff]  ;;  %v2599_v23 = vld [vmem:[%s5878_s4 + $0xb8] sm:$0xff]  ;;  %v3922_v24 = vpack.c.bf16 %v60_v21, %v59_v20  ;;  %v61_v26 = vld [vmem:[%s5878_s4 + $0x40] sm:$0xff] }
   0x8   :  { %v3946_v25 = vpack.c.bf16 %v2599_v23, %v2598_v22  ;;  %v62_v27 = vld [vmem:[%s5878_s4 + $0x48] sm:$0xff]  ;;  %v2600_v28 = vld [vmem:[%s5878_s4 + $0xc0] sm:$0xff]  ;;  %v63_v32 = vld [vmem:[%s5878_s4 + $0x50] sm:$0xff] }
   0x9   :  { %3917 = vmatpush3.bf16.msra.mxu0 %v3916_v12  ;;  %v2601_v29 = vld [vmem:[%s5878_s4 + $0xc8] sm:$0xff]  ;;  %v3925_v30 = vpack.c.bf16 %v62_v27, %v61_v26  ;;  %v64_v33 = vld [vmem:[%s5878_s4 + $0x58] sm:$0xff]  ;;  %v2602_v34 = vld [vmem:[%s5878_s4 + $0xd0] sm:$0xff] }
   0xa   :  { %3941 = vmatpush3.bf16.msra.mxu1 %v3940_v13  ;;  %3918 = vmatprep.subr.bf16.mxu0 %v4478_v3  ;;  %v3949_v31 = vpack.c.bf16 %v2601_v29, %v2600_v28  ;;  %v2603_v35 = vld [vmem:[%s5878_s4 + $0xd8] sm:$0xff]  ;;  %v3928_v36 = vpack.c.bf16 %v64_v33, %v63_v32  ;;  %v65_v38 = vld [vmem:[%s5878_s4 + $0x60] sm:$0xff]  ;;  %v66_v39 = vld [vmem:[%s5878_s4 + $0x68] sm:$0xff] }
   0xb   :  { %3942 = vmatprep.subr.bf16.mxu1 %v4478_v3  ;;  %v3952_v37 = vpack.c.bf16 %v2603_v35, %v2602_v34  ;;  %v2604_v40 = vld [vmem:[%s5878_s4 + $0xe0] sm:$0xff]  ;;  %v2605_v41 = vld [vmem:[%s5878_s4 + $0xe8] sm:$0xff]  ;;  %v3931_v42 = vpack.c.bf16 %v66_v39, %v65_v38  ;;  %v67_v44 = vld [vmem:[%s5878_s4 + $0x70] sm:$0xff] }
   0xc   :  { %v3955_v43 = vpack.c.bf16 %v2605_v41, %v2604_v40  ;;  %v68_v45 = vld [vmem:[%s5878_s4 + $0x78] sm:$0xff]  ;;  %v2606_v46 = vld [vmem:[%s5878_s4 + $0xf0] sm:$0xff]  ;;  %v2608_v50 = vld [vmem:[%s5878_s4 + $0x100] sm:$0xff] }
   0xd   :  { %3920 = vmatpush3.bf16.msra.mxu0 %v3919_v18  ;;  %v2607_v47 = vld [vmem:[%s5878_s4 + $0xf8] sm:$0xff]  ;;  %v3934_v48 = vpack.c.bf16 %v68_v45, %v67_v44  ;;  %v2609_v51 = vld [vmem:[%s5878_s4 + $0x108] sm:$0xff]  ;;  %v2624_v52 = vld [vmem:[%s5878_s4 + $0x180] sm:$0xff] }
   0xe   :  { %3944 = vmatpush3.bf16.msra.mxu1 %v3943_v19  ;;  %3921 = vmatprep.subr.bf16.mxu0 %v4478_v3  ;;  %v3958_v49 = vpack.c.bf16 %v2607_v47, %v2606_v46  ;;  %v2625_v53 = vld [vmem:[%s5878_s4 + $0x188] sm:$0xff]  ;;  %v52_v54 = vld [vmem:[%s5893_s20] sm:$0x1]  ;;  %v3961_v55 = vpack.c.bf16 %v2609_v51, %v2608_v50  ;;  %v141_v56 = vld [vmem:[%s5893_s20 + $0x1] sm:$0x1] }
   0xf   :  { %3945 = vmatprep.subr.bf16.mxu1 %v4478_v3  ;;  %v3985_v57 = vpack.c.bf16 %v2625_v53, %v2624_v52  ;;  %v2610_v58 = vld [vmem:[%s5878_s4 + $0x110] sm:$0xff]  ;;  %v2611_v59 = vld [vmem:[%s5878_s4 + $0x118] sm:$0xff]  ;;  %v2612_v0 = vld [vmem:[%s5878_s4 + $0x120] sm:$0xff] }
  0x10   :  { %v2626_v60 = vld [vmem:[%s5878_s4 + $0x190] sm:$0xff]  ;;  %v2627_v61 = vld [vmem:[%s5878_s4 + $0x198] sm:$0xff]  ;;  %v3964_v62 = vpack.c.bf16 %v2611_v59, %v2610_v58  ;;  %v2613_v1 = vld [vmem:[%s5878_s4 + $0x128] sm:$0xff] }
  0x11   :  { %3923 = vmatpush3.bf16.msra.mxu0 %v3922_v24  ;;  %v3988_v63 = vpack.c.bf16 %v2627_v61, %v2626_v60  ;;  %v2628_v2 = vld [vmem:[%s5878_s4 + $0x1a0] sm:$0xff]  ;;  %v2629_v4 = vld [vmem:[%s5878_s4 + $0x1a8] sm:$0xff]  ;;  %v3967_v5 = vpack.c.bf16 %v2613_v1, %v2612_v0  ;;  %v2614_v7 = vld [vmem:[%s5878_s4 + $0x130] sm:$0xff] }
  0x12   :  { %3947 = vmatpush3.bf16.msra.mxu1 %v3946_v25  ;;  %3924 = vmatprep.subr.bf16.mxu0 %v4478_v3  ;;  %v3991_v6 = vpack.c.bf16 %v2629_v4, %v2628_v2  ;;  %v2615_v8 = vld [vmem:[%s5878_s4 + $0x138] sm:$0xff]  ;;  %v2630_v9 = vld [vmem:[%s5878_s4 + $0x1b0] sm:$0xff]  ;;  %v2616_v14 = vld [vmem:[%s5878_s4 + $0x140] sm:$0xff] }
  0x13   :  { %3948 = vmatprep.subr.bf16.mxu1 %v4478_v3  ;;  %v2631_v10 = vld [vmem:[%s5878_s4 + $0x1b8] sm:$0xff]  ;;  %v3970_v12 = vpack.c.bf16 %v2615_v8, %v2614_v7  ;;  %v2617_v15 = vld [vmem:[%s5878_s4 + $0x148] sm:$0xff]  ;;  %v2632_v16 = vld [vmem:[%s5878_s4 + $0x1c0] sm:$0xff] }
  0x14   :  { %v3994_v13 = vpack.c.bf16 %v2631_v10, %v2630_v9  ;;  %v2633_v17 = vld [vmem:[%s5878_s4 + $0x1c8] sm:$0xff] }
  0x15   :  { %3926 = vmatpush3.bf16.msra.mxu0 %v3925_v30 }
  0x16   :  { %3950 = vmatpush3.bf16.msra.mxu1 %v3949_v31  ;;  %3927 = vmatprep.subr.bf16.mxu0 %v4478_v3 }
  0x17   :  { %3951 = vmatprep.subr.bf16.mxu1 %v4478_v3 }
  0x19   :  { %3929 = vmatpush3.bf16.msra.mxu0 %v3928_v36 }
  0x1a   :  { %3953 = vmatpush3.bf16.msra.mxu1 %v3952_v37  ;;  %3930 = vmatprep.subr.bf16.mxu0 %v4478_v3 }
  0x1b   :  { %3954 = vmatprep.subr.bf16.mxu1 %v4478_v3 }
  0x1d   :  { %3932 = vmatpush3.bf16.msra.mxu0 %v3931_v42 }
  0x1e   :  { %3956 = vmatpush3.bf16.msra.mxu1 %v3955_v43  ;;  %3933 = vmatprep.subr.bf16.mxu0 %v4478_v3 }
  0x1f   :  { %3957 = vmatprep.subr.bf16.mxu1 %v4478_v3 }
  0x21   :  { %3935 = vmatpush3.bf16.msra.mxu0 %v3934_v48 }
  0x22   :  { %3959 = vmatpush3.bf16.msra.mxu1 %v3958_v49  ;;  %3960 = vmatprep.subr.bf16.mxu0 %v4478_v3 }
  0x23   :  { %3984 = vmatprep.subr.bf16.mxu1 %v4478_v3 }
  0x24   :  { %3233 = vmatmul.mubr.f32.vlgmr.msra.gmra.mrb[0].mxu0 %v52_v54 }
  0x25   :  { %3268 = vmatmul.mubr.f32.vlgmr.msra.gmra.mrb[0].mxu1 %v141_v56  ;;  %3962 = vmatpush3.bf16.msra.mxu0 %v3961_v55 }
  0x26   :  { %3986 = vmatpush3.bf16.msra.mxu1 %v3985_v57  ;;  %3963 = vmatprep.subr.bf16.mxu0 %v4478_v3 }
  0x27   :  { %3987 = vmatprep.subr.bf16.mxu1 %v4478_v3  ;;  %3302 = vmatprep.mubr.msk.f32.mxu0 %vm4479_vm0, %v4480_v11 }
  0x28   :  { %3337 = vmatprep.mubr.msk.f32.mxu1 %vm4479_vm0, %v4480_v11 }
  0x29   :  { %3965 = vmatpush3.bf16.msra.mxu0 %v3964_v62 }
  0x2a   :  { %3989 = vmatpush3.bf16.msra.mxu1 %v3988_v63  ;;  %3966 = vmatprep.subr.bf16.mxu0 %v4478_v3 }
  0x2b   :  { %3990 = vmatprep.subr.bf16.mxu1 %v4478_v3 }
  0x2d   :  { %3968 = vmatpush3.bf16.msra.mxu0 %v3967_v5 }
  0x2e   :  { %3992 = vmatpush3.bf16.msra.mxu1 %v3991_v6  ;;  %3969 = vmatprep.subr.bf16.mxu0 %v4478_v3 }
  0x2f   :  { %3993 = vmatprep.subr.bf16.mxu1 %v4478_v3 }
  0x30   :  { %23 = vsyncpa [#allocation8], 0  ;;  %v3973_v18 = vpack.c.bf16 %v2617_v15, %v2616_v14  ;;  %v3997_v19 = vpack.c.bf16 %v2633_v17, %v2632_v16  ;;  %v2618_v20 = vld [vmem:[%s5878_s4 + $0x150] sm:$0xff]  ;;  %v2619_v21 = vld [vmem:[%s5878_s4 + $0x158] sm:$0xff]  ;;  %vm139_vm1 = vcmask 778240   ;;  %vm780_vm2 = vcmask 785408  }
  0x31   :  { %3971 = vmatpush3.bf16.msra.mxu0 %v3970_v12  ;;  %v2634_v22 = vld [vmem:[%s5878_s4 + $0x1d0] sm:$0xff]  ;;  %v2635_v23 = vld [vmem:[%s5878_s4 + $0x1d8] sm:$0xff]  ;;  %v3976_v24 = vpack.c.bf16 %v2619_v21, %v2618_v20  ;;  %v2620_v26 = vld [vmem:[%s5878_s4 + $0x160] sm:$0xff]  ;;  %vm1026_vm5 = vcmask 64512   ;;  %s4484_s24 = smov 32   ;;  %vm1887_vm7 = vcmask 261120  }
  0x32   :  { %3995 = vmatpush3.bf16.msra.mxu1 %v3994_v13  ;;  %3972 = vmatprep.subr.bf16.mxu0 %v4478_v3  ;;  %v4000_v25 = vpack.c.bf16 %v2635_v23, %v2634_v22  ;;  %v2621_v27 = vld [vmem:[%s5878_s4 + $0x168] sm:$0xff]  ;;  %v2636_v28 = vld [vmem:[%s5878_s4 + $0x1e0] sm:$0xff]  ;;  %v2622_v32 = vld [vmem:[%s5878_s4 + $0x170] sm:$0xff]  ;;  %vm1960_vm8 = vcmask 57344   ;;  %s4485_s21 = smov [#allocation7]  }
  0x33   :  { %3996 = vmatprep.subr.bf16.mxu1 %v4478_v3  ;;  %v2637_v29 = vld [vmem:[%s5878_s4 + $0x1e8] sm:$0xff]  ;;  %v3979_v30 = vpack.c.bf16 %v2621_v27, %v2620_v26  ;;  %v2623_v33 = vld [vmem:[%s5878_s4 + $0x178] sm:$0xff]  ;;  %v2638_v34 = vld [vmem:[%s5878_s4 + $0x1f0] sm:$0xff]  ;;  %s2567_s22 = sshll.u32 %s4485_s21, 4  ;;  %s2568_s22 = int_to_ptr.vmem [resolvable:$true] %s2567_s22 }
  0x34   :  { %v4003_v31 = vpack.c.bf16 %v2637_v29, %v2636_v28  ;;  %v2639_v35 = vld [vmem:[%s5878_s4 + $0x1f8] sm:$0xff]  ;;  %v3982_v36 = vpack.c.bf16 %v2623_v33, %v2622_v32  ;;  %v2640_v38 = vld [vmem:[%s5878_s4 + $0x200] sm:$0xff]  ;;  %v2641_v39 = vld [vmem:[%s5878_s4 + $0x208] sm:$0xff]  ;;  %p4413_p1 = scmp.lt.s32.totalorder %s2568_s22, %s2568_s22 }
  0x35   :  { %3974 = vmatpush3.bf16.msra.mxu0 %v3973_v18  ;;  %v4006_v37 = vpack.c.bf16 %v2639_v35, %v2638_v34  ;;  %v2656_v40 = vld [vmem:[%s5878_s4 + $0x280] sm:$0xff]  ;;  %v2657_v41 = vld [vmem:[%s5878_s4 + $0x288] sm:$0xff]  ;;  %v4009_v43 = vpack.c.bf16 %v2641_v39, %v2640_v38  ;;  %v2642_v46 = vld [vmem:[%s5878_s4 + $0x210] sm:$0xff] }
  0x36   :  { %3998 = vmatpush3.bf16.msra.mxu1 %v3997_v19  ;;  %3975 = vmatprep.subr.bf16.mxu0 %v4478_v3  ;;  %v230_v42 = vld [vmem:[%s5893_s20 + $0x2] sm:$0x1]  ;;  %v319_v44 = vld [vmem:[%s5893_s20 + $0x3] sm:$0x1]  ;;  %v4033_v45 = vpack.c.bf16 %v2657_v41, %v2656_v40  ;;  %v2643_v47 = vld [vmem:[%s5878_s4 + $0x218] sm:$0xff] }
  0x37   :  { %3999 = vmatprep.subr.bf16.mxu1 %v4478_v3  ;;  %v2658_v48 = vld [vmem:[%s5878_s4 + $0x290] sm:$0xff]  ;;  %v2659_v49 = vld [vmem:[%s5878_s4 + $0x298] sm:$0xff]  ;;  %v4012_v50 = vpack.c.bf16 %v2643_v47, %v2642_v46  ;;  %v2644_v52 = vld [vmem:[%s5878_s4 + $0x220] sm:$0xff] }
  0x38   :  { %v4036_v51 = vpack.c.bf16 %v2659_v49, %v2658_v48  ;;  %v2645_v53 = vld [vmem:[%s5878_s4 + $0x228] sm:$0xff]  ;;  %v2660_v54 = vld [vmem:[%s5878_s4 + $0x2a0] sm:$0xff]  ;;  %v2646_v58 = vld [vmem:[%s5878_s4 + $0x230] sm:$0xff] }
  0x39   :  { %3977 = vmatpush3.bf16.msra.mxu0 %v3976_v24  ;;  %v2661_v55 = vld [vmem:[%s5878_s4 + $0x2a8] sm:$0xff]  ;;  %v4015_v56 = vpack.c.bf16 %v2645_v53, %v2644_v52  ;;  %v2647_v59 = vld [vmem:[%s5878_s4 + $0x238] sm:$0xff]  ;;  %v2662_v60 = vld [vmem:[%s5878_s4 + $0x2b0] sm:$0xff] }
  0x3a   :  { %4001 = vmatpush3.bf16.msra.mxu1 %v4000_v25  ;;  %3978 = vmatprep.subr.bf16.mxu0 %v4478_v3  ;;  %v4039_v57 = vpack.c.bf16 %v2661_v55, %v2660_v54  ;;  %v2663_v61 = vld [vmem:[%s5878_s4 + $0x2b8] sm:$0xff]  ;;  %v4018_v62 = vpack.c.bf16 %v2647_v59, %v2646_v58  ;;  %v2648_v0 = vld [vmem:[%s5878_s4 + $0x240] sm:$0xff]  ;;  %v2649_v1 = vld [vmem:[%s5878_s4 + $0x248] sm:$0xff] }
  0x3b   :  { %4002 = vmatprep.subr.bf16.mxu1 %v4478_v3  ;;  %v4042_v63 = vpack.c.bf16 %v2663_v61, %v2662_v60  ;;  %v2664_v2 = vld [vmem:[%s5878_s4 + $0x2c0] sm:$0xff]  ;;  %v2665_v4 = vld [vmem:[%s5878_s4 + $0x2c8] sm:$0xff]  ;;  %v4021_v5 = vpack.c.bf16 %v2649_v1, %v2648_v0  ;;  %v2650_v7 = vld [vmem:[%s5878_s4 + $0x250] sm:$0xff] }
  0x3c   :  { %v4045_v6 = vpack.c.bf16 %v2665_v4, %v2664_v2  ;;  %v2651_v8 = vld [vmem:[%s5878_s4 + $0x258] sm:$0xff]  ;;  %v2666_v9 = vld [vmem:[%s5878_s4 + $0x2d0] sm:$0xff]  ;;  %v2652_v14 = vld [vmem:[%s5878_s4 + $0x260] sm:$0xff] }
  0x3d   :  { %3980 = vmatpush3.bf16.msra.mxu0 %v3979_v30  ;;  %v2667_v10 = vld [vmem:[%s5878_s4 + $0x2d8] sm:$0xff]  ;;  %v4024_v12 = vpack.c.bf16 %v2651_v8, %v2650_v7  ;;  %v2653_v15 = vld [vmem:[%s5878_s4 + $0x268] sm:$0xff]  ;;  %v2668_v16 = vld [vmem:[%s5878_s4 + $0x2e0] sm:$0xff] }
  0x3e   :  { %4004 = vmatpush3.bf16.msra.mxu1 %v4003_v31  ;;  %3981 = vmatprep.subr.bf16.mxu0 %v4478_v3  ;;  %v4048_v13 = vpack.c.bf16 %v2667_v10, %v2666_v9  ;;  %v2669_v17 = vld [vmem:[%s5878_s4 + $0x2e8] sm:$0xff]  ;;  %v4027_v18 = vpack.c.bf16 %v2653_v15, %v2652_v14  ;;  %v2654_v20 = vld [vmem:[%s5878_s4 + $0x270] sm:$0xff]  ;;  %v2655_v21 = vld [vmem:[%s5878_s4 + $0x278] sm:$0xff] }
  0x3f   :  { %4005 = vmatprep.subr.bf16.mxu1 %v4478_v3  ;;  %v4051_v19 = vpack.c.bf16 %v2669_v17, %v2668_v16  ;;  %v2670_v22 = vld [vmem:[%s5878_s4 + $0x2f0] sm:$0xff]  ;;  %v2671_v23 = vld [vmem:[%s5878_s4 + $0x2f8] sm:$0xff]  ;;  %v4030_v24 = vpack.c.bf16 %v2655_v21, %v2654_v20  ;;  %v2672_v26 = vld [vmem:[%s5878_s4 + $0x300] sm:$0xff] }
  0x40   :  { %v4054_v25 = vpack.c.bf16 %v2671_v23, %v2670_v22  ;;  %v2673_v27 = vld [vmem:[%s5878_s4 + $0x308] sm:$0xff]  ;;  %v2688_v28 = vld [vmem:[%s5878_s4 + $0x380] sm:$0xff]  ;;  %v2674_v34 = vld [vmem:[%s5878_s4 + $0x310] sm:$0xff] }
  0x41   :  { %3983 = vmatpush3.bf16.msra.mxu0 %v3982_v36  ;;  %v2689_v29 = vld [vmem:[%s5878_s4 + $0x388] sm:$0xff]  ;;  %v408_v30 = vld [vmem:[%s5893_s20 + $0x4] sm:$0x1]  ;;  %v4057_v31 = vpack.c.bf16 %v2673_v27, %v2672_v26  ;;  %v497_v32 = vld [vmem:[%s5893_s20 + $0x5] sm:$0x1] }
  0x42   :  { %4007 = vmatpush3.bf16.msra.mxu1 %v4006_v37  ;;  %4008 = vmatprep.subr.bf16.mxu0 %v4478_v3  ;;  %v4081_v33 = vpack.c.bf16 %v2689_v29, %v2688_v28  ;;  %v2675_v35 = vld [vmem:[%s5878_s4 + $0x318] sm:$0xff]  ;;  %v2690_v36 = vld [vmem:[%s5878_s4 + $0x390] sm:$0xff]  ;;  %v2676_v40 = vld [vmem:[%s5878_s4 + $0x320] sm:$0xff] }
  0x43   :  { %4032 = vmatprep.subr.bf16.mxu1 %v4478_v3  ;;  %v2691_v37 = vld [vmem:[%s5878_s4 + $0x398] sm:$0xff]  ;;  %v4060_v38 = vpack.c.bf16 %v2675_v35, %v2674_v34  ;;  %v2677_v41 = vld [vmem:[%s5878_s4 + $0x328] sm:$0xff]  ;;  %v2678_v46 = vld [vmem:[%s5878_s4 + $0x330] sm:$0xff] }
  0x44   :  { %3303 = vmatmul.mubr.f32.vlgmr.msra.gmra.mrb[2].mxu0 %v230_v42  ;;  %v4084_v39 = vpack.c.bf16 %v2691_v37, %v2690_v36  ;;  %v2692_v42 = vld [vmem:[%s5878_s4 + $0x3a0] sm:$0xff]  ;;  %v2679_v47 = vld [vmem:[%s5878_s4 + $0x338] sm:$0xff]  ;;  %v2694_v48 = vld [vmem:[%s5878_s4 + $0x3b0] sm:$0xff] }
  0x45   :  { %3338 = vmatmul.mubr.f32.vlgmr.msra.gmra.mrb[2].mxu1 %v319_v44  ;;  %4010 = vmatpush3.bf16.msra.mxu0 %v4009_v43  ;;  %v2693_v43 = vld [vmem:[%s5878_s4 + $0x3a8] sm:$0xff]  ;;  %v4063_v44 = vpack.c.bf16 %v2677_v41, %v2676_v40  ;;  %v2695_v49 = vld [vmem:[%s5878_s4 + $0x3b8] sm:$0xff]  ;;  %v2680_v52 = vld [vmem:[%s5878_s4 + $0x340] sm:$0xff] }
  0x46   :  { %4034 = vmatpush3.bf16.msra.mxu1 %v4033_v45  ;;  %4011 = vmatprep.subr.bf16.mxu0 %v4478_v3  ;;  %v4087_v45 = vpack.c.bf16 %v2693_v43, %v2692_v42  ;;  %v2681_v53 = vld [vmem:[%s5878_s4 + $0x348] sm:$0xff]  ;;  %v2696_v54 = vld [vmem:[%s5878_s4 + $0x3c0] sm:$0xff]  ;;  %v2682_v58 = vld [vmem:[%s5878_s4 + $0x350] sm:$0xff] }
  0x47   :  { %4035 = vmatprep.subr.bf16.mxu1 %v4478_v3  ;;  %3372 = vmatprep.mubr.msk.f32.mxu0 %vm4479_vm0, %v4480_v11  ;;  %v2697_v55 = vld [vmem:[%s5878_s4 + $0x3c8] sm:$0xff]  ;;  %v2683_v59 = vld [vmem:[%s5878_s4 + $0x358] sm:$0xff]  ;;  %v2698_v60 = vld [vmem:[%s5878_s4 + $0x3d0] sm:$0xff] }
  0x48   :  { %3407 = vmatprep.mubr.msk.f32.mxu1 %vm4479_vm0, %v4480_v11  ;;  %v2699_v61 = vld [vmem:[%s5878_s4 + $0x3d8] sm:$0xff]  ;;  %v2684_v0 = vld [vmem:[%s5878_s4 + $0x360] sm:$0xff]  ;;  %v2685_v1 = vld [vmem:[%s5878_s4 + $0x368] sm:$0xff] }
  0x49   :  { %4013 = vmatpush3.bf16.msra.mxu0 %v4012_v50  ;;  %v4066_v50 = vpack.c.bf16 %v2679_v47, %v2678_v46  ;;  %v2700_v2 = vld [vmem:[%s5878_s4 + $0x3e0] sm:$0xff]  ;;  %v2701_v4 = vld [vmem:[%s5878_s4 + $0x3e8] sm:$0xff]  ;;  %v2686_v7 = vld [vmem:[%s5878_s4 + $0x370] sm:$0xff] }
  0x4a   :  { %4037 = vmatpush3.bf16.msra.mxu1 %v4036_v51  ;;  %4014 = vmatprep.subr.bf16.mxu0 %v4478_v3  ;;  %v4090_v51 = vpack.c.bf16 %v2695_v49, %v2694_v48  ;;  %v2687_v8 = vld [vmem:[%s5878_s4 + $0x378] sm:$0xff]  ;;  %v2702_v9 = vld [vmem:[%s5878_s4 + $0x3f0] sm:$0xff]  ;;  %v586_v14 = vld [vmem:[%s5893_s20 + $0x6] sm:$0x1] }
  0x4b   :  { %4038 = vmatprep.subr.bf16.mxu1 %v4478_v3  ;;  %v2703_v10 = vld [vmem:[%s5878_s4 + $0x3f8] sm:$0xff]  ;;  %v675_v15 = vld [vmem:[%s5893_s20 + $0x7] sm:$0x1]  ;;  %v769_v17 = vld [vmem:[%s5880_s6 + $0x8] sm:$0xff] }
  0x4c   :  { %v768_v16 = vld [vmem:[%s5880_s6] sm:$0xff]  ;;  %v771_v20 = vld [vmem:[%s5880_s6 + $0x18] sm:$0xff]  ;;  %v855_v22 = vld [vmem:[%s5881_s7 + $0x8] sm:$0xff] }
  0x4d   :  { %4016 = vmatpush3.bf16.msra.mxu0 %v4015_v56  ;;  %v4069_v56 = vpack.c.bf16 %v2681_v53, %v2680_v52  ;;  %v854_v21 = vld [vmem:[%s5881_s7] sm:$0xff]  ;;  %v857_v26 = vld [vmem:[%s5881_s7 + $0x18] sm:$0xff]  ;;  %v773_v28 = vld [vmem:[%s5880_s6 + $0x28] sm:$0xff]  ;;  %v4481_v52 = vmov 0  }
  0x4e   :  { %4040 = vmatpush3.bf16.msra.mxu1 %v4039_v57  ;;  %4017 = vmatprep.subr.bf16.mxu0 %v4478_v3  ;;  %v4093_v57 = vpack.c.bf16 %v2697_v55, %v2696_v54  ;;  %v4123_v23 = vpack.c.bf16 %v855_v22, %v854_v21  ;;  %v772_v27 = vld [vmem:[%s5880_s6 + $0x20] sm:$0xff]  ;;  %v775_v34 = vld [vmem:[%s5880_s6 + $0x38] sm:$0xff]  ;;  %v860_v40 = vld [vmem:[%s5881_s7 + $0x30] sm:$0xff] }
  0x4f   :  { %4041 = vmatprep.subr.bf16.mxu1 %v4478_v3  ;;  %v776_v37 = vld [vmem:[%s5880_s6 + $0x40] sm:$0xff]  ;;  %v861_v41 = vld [vmem:[%s5881_s7 + $0x38] sm:$0xff]  ;;  %v778_v43 = vld [vmem:[%s5880_s6 + $0x50] sm:$0xff]  ;;  %4390 = vset.pattern.permute.xlu0 %v4481_v52 }
  0x50   :  { %v4132_v42 = vpack.c.bf16 %v861_v41, %v860_v40  ;;  %v863_v47 = vld [vmem:[%s5881_s7 + $0x48] sm:$0xff]  ;;  %v864_v49 = vld [vmem:[%s5881_s7 + $0x50] sm:$0xff]  ;;  %4391 = vset.pattern.permute.xlu1 %v4481_v52  ;;  %v1136_v40 = vld [vmem:[%s5884_s10 + $0x18] sm:$0xff] }
  0x51   :  { %4019 = vmatpush3.bf16.msra.mxu0 %v4018_v62  ;;  %v4072_v62 = vpack.c.bf16 %v2683_v59, %v2682_v58 }
  0x52   :  { %4043 = vmatpush3.bf16.msra.mxu1 %v4042_v63  ;;  %4020 = vmatprep.subr.bf16.mxu0 %v4478_v3  ;;  %v4096_v63 = vpack.c.bf16 %v2699_v61, %v2698_v60 }
  0x53   :  { %4044 = vmatprep.subr.bf16.mxu1 %v4478_v3 }
  0x55   :  { %4022 = vmatpush3.bf16.msra.mxu0 %v4021_v5  ;;  %v4075_v5 = vpack.c.bf16 %v2685_v1, %v2684_v0 }
  0x56   :  { %4046 = vmatpush3.bf16.msra.mxu1 %v4045_v6  ;;  %4023 = vmatprep.subr.bf16.mxu0 %v4478_v3  ;;  %v4099_v6 = vpack.c.bf16 %v2701_v4, %v2700_v2 }
  0x57   :  { %4047 = vmatprep.subr.bf16.mxu1 %v4478_v3 }
  0x59   :  { %4025 = vmatpush3.bf16.msra.mxu0 %v4024_v12  ;;  %v4078_v12 = vpack.c.bf16 %v2687_v8, %v2686_v7 }
  0x5a   :  { %4049 = vmatpush3.bf16.msra.mxu1 %v4048_v13  ;;  %4026 = vmatprep.subr.bf16.mxu0 %v4478_v3  ;;  %v4102_v13 = vpack.c.bf16 %v2703_v10, %v2702_v9  ;;  %v936_v10 = vld [vmem:[%s5882_s8] sm:$0x1] }
  0x5b   :  { %4050 = vmatprep.subr.bf16.mxu1 %v4478_v3 }
  0x5d   :  { %4028 = vmatpush3.bf16.msra.mxu0 %v4027_v18  ;;  %v770_v18 = vld [vmem:[%s5880_s6 + $0x10] sm:$0xff] }
  0x5e   :  { %4052 = vmatpush3.bf16.msra.mxu1 %v4051_v19  ;;  %4029 = vmatprep.subr.bf16.mxu0 %v4478_v3  ;;  %v4105_v19 = vpack.c.bf16 %v769_v17, %v768_v16 }
  0x5f   :  { %4053 = vmatprep.subr.bf16.mxu1 %v4478_v3 }
  0x61   :  { %4031 = vmatpush3.bf16.msra.mxu0 %v4030_v24  ;;  %v856_v24 = vld [vmem:[%s5881_s7 + $0x10] sm:$0xff] }
  0x62   :  { %4055 = vmatpush3.bf16.msra.mxu1 %v4054_v25  ;;  %4056 = vmatprep.subr.bf16.mxu0 %v4478_v3  ;;  %v4108_v25 = vpack.c.bf16 %v771_v20, %v770_v18  ;;  %v4126_v29 = vpack.c.bf16 %v857_v26, %v856_v24  ;;  %v1015_v18 = vlaneseq }
  0x63   :  { %4080 = vmatprep.subr.bf16.mxu1 %v4478_v3 }
  0x64   :  { %3373 = vmatmul.mubr.f32.vlgmr.msra.gmra.mrb[4].mxu0 %v408_v30  ;;  %v858_v30 = vld [vmem:[%s5881_s7 + $0x20] sm:$0xff] }
  0x65   :  { %3408 = vmatmul.mubr.f32.vlgmr.msra.gmra.mrb[4].mxu1 %v497_v32  ;;  %4058 = vmatpush3.bf16.msra.mxu0 %v4057_v31  ;;  %v859_v31 = vld [vmem:[%s5881_s7 + $0x28] sm:$0xff]  ;;  %v4111_v32 = vpack.c.bf16 %v773_v28, %v772_v27 }
  0x66   :  { %4082 = vmatpush3.bf16.msra.mxu1 %v4081_v33  ;;  %4059 = vmatprep.subr.bf16.mxu0 %v4478_v3  ;;  %v774_v33 = vld [vmem:[%s5880_s6 + $0x30] sm:$0xff]  ;;  %v4129_v35 = vpack.c.bf16 %v859_v31, %v858_v30 }
  0x67   :  { %4083 = vmatprep.subr.bf16.mxu1 %v4478_v3  ;;  %3442 = vmatprep.mubr.msk.f32.mxu0 %vm4479_vm0, %v4480_v11  ;;  %v4114_v36 = vpack.c.bf16 %v775_v34, %v774_v33  ;;  %v1117_v34 = vld [vmem:[%s5875_s1] sm:$0xff] }
  0x68   :  { %3477 = vmatprep.mubr.msk.f32.mxu1 %vm4479_vm0, %v4480_v11 }
  0x69   :  { %4061 = vmatpush3.bf16.msra.mxu0 %v4060_v38  ;;  %v777_v38 = vld [vmem:[%s5880_s6 + $0x48] sm:$0xff] }
  0x6a   :  { %4085 = vmatpush3.bf16.msra.mxu1 %v4084_v39  ;;  %4062 = vmatprep.subr.bf16.mxu0 %v4478_v3  ;;  %v4117_v39 = vpack.c.bf16 %v777_v38, %v776_v37  ;;  %v1134_v37 = vld [vmem:[%s5884_s10 + $0x8] sm:$0xff] }
  0x6b   :  { %4086 = vmatprep.subr.bf16.mxu1 %v4478_v3 }
  0x6d   :  { %4064 = vmatpush3.bf16.msra.mxu0 %v4063_v44  ;;  %v779_v44 = vld [vmem:[%s5880_s6 + $0x58] sm:$0xff]  ;;  %s4482_s6 = smov 96  }
  0x6e   :  { %4088 = vmatpush3.bf16.msra.mxu1 %v4087_v45  ;;  %4065 = vmatprep.subr.bf16.mxu0 %v4478_v3  ;;  %v862_v45 = vld [vmem:[%s5881_s7 + $0x40] sm:$0xff]  ;;  %v4120_v46 = vpack.c.bf16 %v779_v44, %v778_v43  ;;  %v1138_v43 = vld [vmem:[%s5884_s10 + $0x28] sm:$0xff] }
  0x6f   :  { %4089 = vmatprep.subr.bf16.mxu1 %v4478_v3  ;;  %v4135_v48 = vpack.c.bf16 %v863_v47, %v862_v45 }
  0x71   :  { %4067 = vmatpush3.bf16.msra.mxu0 %v4066_v50  ;;  %v865_v50 = vld [vmem:[%s5881_s7 + $0x58] sm:$0xff]  ;;  %s4408_s7 = scalar_lea.vmem %s2568_s22, 128 }
  0x72   :  { %4091 = vmatpush3.bf16.msra.mxu1 %v4090_v51  ;;  %4068 = vmatprep.subr.bf16.mxu0 %v4478_v3  ;;  %v4138_v51 = vpack.c.bf16 %v865_v50, %v864_v49  ;;  %v2710_v49 = vld [vmem:[%s5884_s10 + $0x80] sm:$0xff]  ;;  %v2711_v50 = vld [vmem:[%s5884_s10 + $0x88] sm:$0xff]  ;;  %p4409_p0 = scmp.ne.s32.totalorder %s2568_s22, %s4408_s7  ;;  %p4414_p2 = scmp.lt.s32.totalorder %s4408_s7, %s4408_s7 }
  0x73   :  { %4092 = vmatprep.subr.bf16.mxu1 %v4478_v3  ;;  %v4165_v52 = vpack.c.bf16 %v2711_v50, %v2710_v49  ;;  %v2730_v50 = vld [vmem:[%s5884_s10 + $0x120] sm:$0xff] }
  0x74   :  { %p4415_p3 = por %p4414_p2, %p4413_p1 }
  0x75   :  { %4070 = vmatpush3.bf16.msra.mxu0 %v4069_v56 }
  0x76   :  { %4094 = vmatpush3.bf16.msra.mxu1 %v4093_v57  ;;  %4071 = vmatprep.subr.bf16.mxu0 %v4478_v3  ;;  %p4416_p4 = pnand %p4415_p3, %p4409_p0 }
  0x77   :  { %4095 = vmatprep.subr.bf16.mxu1 %v4478_v3 }
  0x79   :  { %4073 = vmatpush3.bf16.msra.mxu0 %v4072_v62 }
  0x7a   :  { %4097 = vmatpush3.bf16.msra.mxu1 %v4096_v63  ;;  %4074 = vmatprep.subr.bf16.mxu0 %v4478_v3 }
  0x7b   :  { %4098 = vmatprep.subr.bf16.mxu1 %v4478_v3 }
  0x7d   :  { %4076 = vmatpush3.bf16.msra.mxu0 %v4075_v5 }
  0x7e   :  { %4100 = vmatpush3.bf16.msra.mxu1 %v4099_v6  ;;  %4077 = vmatprep.subr.bf16.mxu0 %v4478_v3  ;;  %v765_v6 = vld [vmem:[%s5879_s5] sm:$0xff] }
  0x7f   :  { %4101 = vmatprep.subr.bf16.mxu1 %v4478_v3 }
  0x81   :  { %4079 = vmatpush3.bf16.msra.mxu0 %v4078_v12 }
  0x82   :  { %4103 = vmatpush3.bf16.msra.mxu1 %v4102_v13  ;;  %4104 = vmatprep.subr.bf16.mxu0 %v4478_v3 }
  0x83   :  { %4122 = vmatprep.subr.bf16.mxu1 %v4478_v3 }
  0x84   :  { %3443 = vmatmul.mubr.f32.vlgmr.msra.gmra.mrb[6].mxu0 %v586_v14 }
  0x85   :  { %3478 = vmatmul.mubr.f32.vlgmr.msra.gmra.mrb[6].mxu1 %v675_v15  ;;  %3504 = vmatprep.mubr.msk.f32.mxu0 %vm4479_vm0, %v4480_v11 }
  0x86   :  { %3531 = vmatprep.mubr.msk.f32.mxu1 %vm4479_vm0, %v4480_v11  ;;  %4106 = vmatpush3.bf16.msra.mxu0 %v4105_v19  ;;  %v1016_v19 = vshrl.u32 %v1015_v18, 7 }
  0x87   :  { %4107 = vmatprep.subr.bf16.mxu0 %v4478_v3  ;;  %4124 = vmatpush3.bf16.msra.mxu1 %v4123_v23  ;;  %v1023_v23 = vld [vmem:[%s5883_s9] sm:$0xff] }
  0x88   :  { %4125 = vmatprep.subr.bf16.mxu1 %v4478_v3  ;;  %v1017_v20 = vsub.s32 0, %v1016_v19  ;;  %vm1024_vm4 = vcmp.gt.f32.partialorder %v1023_v23, 0.0  ;;  %v2722_v19 = vld [vmem:[%s5884_s10 + $0xe0] sm:$0xff]  ;;  %v1148_v23 = vld [vmem:[%s5884_s10 + $0x78] sm:$0xff] }
  0x8a   :  { %4109 = vmatpush3.bf16.msra.mxu0 %v4108_v25 }
  0x8b   :  { %4110 = vmatprep.subr.bf16.mxu0 %v4478_v3  ;;  %4127 = vmatpush3.bf16.msra.mxu1 %v4126_v29 }
  0x8c   :  { %4128 = vmatprep.subr.bf16.mxu1 %v4478_v3 }
  0x8e   :  { %4112 = vmatpush3.bf16.msra.mxu0 %v4111_v32 }
  0x8f   :  { %4113 = vmatprep.subr.bf16.mxu0 %v4478_v3  ;;  %4130 = vmatpush3.bf16.msra.mxu1 %v4129_v35  ;;  %v1118_v35 = vsub.f32 1.0, %v1117_v34 }
  0x90   :  { %4131 = vmatprep.subr.bf16.mxu1 %v4478_v3 }
  0x92   :  { %4115 = vmatpush3.bf16.msra.mxu0 %v4114_v36  ;;  %v1133_v36 = vld [vmem:[%s5884_s10] sm:$0xff] }
  0x93   :  { %4116 = vmatprep.subr.bf16.mxu0 %v4478_v3  ;;  %4133 = vmatpush3.bf16.msra.mxu1 %v4132_v42  ;;  %v4141_v38 = vpack.c.bf16 %v1134_v37, %v1133_v36  ;;  %v1137_v42 = vld [vmem:[%s5884_s10 + $0x20] sm:$0xff] }
  0x94   :  { %4134 = vmatprep.subr.bf16.mxu1 %v4478_v3  ;;  %v4147_v44 = vpack.c.bf16 %v1138_v43, %v1137_v42  ;;  %v2742_v37 = vld [vmem:[%s5884_s10 + $0x180] sm:$0xff]  ;;  %v2729_v42 = vld [vmem:[%s5884_s10 + $0x118] sm:$0xff] }
  0x96   :  { %4118 = vmatpush3.bf16.msra.mxu0 %v4117_v39  ;;  %v1135_v39 = vld [vmem:[%s5884_s10 + $0x10] sm:$0xff] }
  0x97   :  { %4119 = vmatprep.subr.bf16.mxu0 %v4478_v3  ;;  %4136 = vmatpush3.bf16.msra.mxu1 %v4135_v48  ;;  %v4144_v41 = vpack.c.bf16 %v1136_v40, %v1135_v39 }
  0x98   :  { %4137 = vmatprep.subr.bf16.mxu1 %v4478_v3 }
  0x9a   :  { %4121 = vmatpush3.bf16.msra.mxu0 %v4120_v46  ;;  %v1119_v46 = vld [vmem:[%s5876_s2] sm:$0xff]  ;;  %s4483_s2 = smov 64  }
  0x9b   :  { %3534 = vmatprep.subr.mxu0 %v4480_v11  ;;  %4139 = vmatpush3.bf16.msra.mxu1 %v4138_v51 }
  0x9c   :  { %3539 = vmatprep.subr.mxu1 %v4480_v11 }
  0xf7   :  { %v135_v53 = vpop.f32.mrb[0].mxu0 }
  0xf8   :  { %140 = vst.msk [vmem:[#allocation2] sm:$0x1] %vm139_vm1, %v135_v53  ;;  %v225_v54 = vpop.f32.mrb[0].mxu1  ;;  %v3234_v55 = vpop.f32.mrb[1].mxu0 }
  0xf9   :  { %229 = vst.msk [vmem:[#allocation2 + $0x1] sm:$0x1] %vm139_vm1, %v225_v54  ;;  %v3269_v56 = vpop.f32.mrb[1].mxu1  ;;  %v2712_v54 = vld [vmem:[%s5884_s10 + $0x90] sm:$0xff]  ;;  %v2713_v55 = vld [vmem:[%s5884_s10 + $0x98] sm:$0xff] }
  0xfa   :  { %v4168_v56 = vpack.c.bf16 %v2713_v55, %v2712_v54  ;;  %v2747_v54 = vld [vmem:[%s5884_s10 + $0x1a8] sm:$0xff] }
 0x117   :  { %v314_v57 = vpop.f32.mrb[2].mxu0 }
 0x118   :  { %318 = vst.msk [vmem:[#allocation2 + $0x2] sm:$0x1] %vm139_vm1, %v314_v57  ;;  %v403_v58 = vpop.f32.mrb[2].mxu1  ;;  %v3304_v59 = vpop.f32.mrb[3].mxu0  ;;  %v2714_v57 = vld [vmem:[%s5884_s10 + $0xa0] sm:$0xff] }
 0x119   :  { %407 = vst.msk [vmem:[#allocation2 + $0x3] sm:$0x1] %vm139_vm1, %v403_v58  ;;  %v3339_v60 = vpop.f32.mrb[3].mxu1  ;;  %v2715_v58 = vld [vmem:[%s5884_s10 + $0xa8] sm:$0xff] }
 0x11a   :  { %v4171_v59 = vpack.c.bf16 %v2715_v58, %v2714_v57  ;;  %v1139_v60 = vld [vmem:[%s5884_s10 + $0x30] sm:$0xff]  ;;  %v2733_v57 = vld [vmem:[%s5884_s10 + $0x138] sm:$0xff] }
 0x137   :  { %v492_v61 = vpop.f32.mrb[4].mxu0 }
 0x138   :  { %496 = vst.msk [vmem:[#allocation2 + $0x4] sm:$0x1] %vm139_vm1, %v492_v61  ;;  %v581_v62 = vpop.f32.mrb[4].mxu1  ;;  %v3374_v63 = vpop.f32.mrb[5].mxu0  ;;  %v1140_v61 = vld [vmem:[%s5884_s10 + $0x38] sm:$0xff] }
 0x139   :  { %585 = vst.msk [vmem:[#allocation2 + $0x5] sm:$0x1] %vm139_vm1, %v581_v62  ;;  %v3409_v0 = vpop.f32.mrb[5].mxu1  ;;  %v4150_v62 = vpack.c.bf16 %v1140_v61, %v1139_v60  ;;  %v2716_v63 = vld [vmem:[%s5884_s10 + $0xb0] sm:$0xff]  ;;  %v2749_v60 = vld [vmem:[%s5884_s10 + $0x1b8] sm:$0xff] }
 0x13a   :  { %v2717_v0 = vld [vmem:[%s5884_s10 + $0xb8] sm:$0xff] }
 0x157   :  { %v670_v1 = vpop.f32.mrb[6].mxu0 }
 0x158   :  { %674 = vst.msk [vmem:[#allocation2 + $0x6] sm:$0x1] %vm139_vm1, %v670_v1  ;;  %v759_v2 = vpop.f32.mrb[6].mxu1  ;;  %v3444_v4 = vpop.f32.mrb[7].mxu0  ;;  %v4174_v1 = vpack.c.bf16 %v2717_v0, %v2716_v63  ;;  %v2735_v63 = vld [vmem:[%s5884_s10 + $0x148] sm:$0xff] }
 0x159   :  { %763 = vst.msk [vmem:[#allocation2 + $0x7] sm:$0x1] %vm139_vm1, %v759_v2  ;;  %v3479_v5 = vpop.f32.mrb[7].mxu1  ;;  %v1141_v2 = vld [vmem:[%s5884_s10 + $0x40] sm:$0xff]  ;;  %v1142_v4 = vld [vmem:[%s5884_s10 + $0x48] sm:$0xff] }
 0x15a   :  { %v4153_v5 = vpack.c.bf16 %v1142_v4, %v1141_v2  ;;  %v2751_v2 = vld [vmem:[%s5884_s10 + $0x1c8] sm:$0xff] }
 0x160   :  { %v764_v7 = vld [vmem:[#allocation2] sm:$0xff] }
 0x161   :  { %v766_v8 = vadd.f32 %v765_v6, %v764_v7  ;;  %v2718_v6 = vld [vmem:[%s5884_s10 + $0xc0] sm:$0xff]  ;;  %v2719_v7 = vld [vmem:[%s5884_s10 + $0xc8] sm:$0xff] }
 0x163   :  { %v767_v9 = vmax.f32 %v766_v8, 0.0  ;;  %v4177_v8 = vpack.c.bf16 %v2719_v7, %v2718_v6  ;;  %v2737_v6 = vld [vmem:[%s5884_s10 + $0x158] sm:$0xff] }
 0x165   :  { %3505 = vmatmul.mubr.msk.f32.vlgmr.msra.gmra.mrb[8].mxu0 %vm780_vm2, %v767_v9  ;;  %3532 = vmatmul.mubr.msk.f32.vlgmr.msra.gmra.mrb[8].mxu1 %vm780_vm2, %v767_v9 }
 0x166   :  { %3535 = vmatpush3.xpose.msk.msra.mxu0 %vm780_vm2, %v767_v9  ;;  %3536 = vmatprep.mubr.msk.f32.mxu0 %vm4479_vm0, %v4480_v11  ;;  %v1143_v9 = vld [vmem:[%s5884_s10 + $0x50] sm:$0xff] }
 0x167   :  { %3541 = vmatprep.mubr.msk.f32.mxu1 %vm4479_vm0, %v4480_v11  ;;  %4140 = vmatprep.subr.bf16.mxu0 %v4478_v3 }
 0x169   :  { %3537 = vmatmul.mubr.msk.f32.vlgmr.msra.gmra.mrb[10].mxu0 %vm780_vm2, %v936_v10  ;;  %v1144_v10 = vld [vmem:[%s5884_s10 + $0x58] sm:$0xff] }
 0x16a   :  { %3576 = vmatprep.mubr.msk.f32.mxu0 %vm4479_vm0, %v4480_v11  ;;  %4142 = vmatpush3.bf16.msra.mxu0 %v4141_v38  ;;  %v2743_v38 = vld [vmem:[%s5884_s10 + $0x188] sm:$0xff] }
 0x16b   :  { %4143 = vmatprep.subr.bf16.mxu0 %v4478_v3 }
 0x16e   :  { %4145 = vmatpush3.bf16.msra.mxu0 %v4144_v41  ;;  %v2728_v41 = vld [vmem:[%s5884_s10 + $0x110] sm:$0xff] }
 0x16f   :  { %4146 = vmatprep.subr.bf16.mxu0 %v4478_v3  ;;  %v4192_v49 = vpack.c.bf16 %v2729_v42, %v2728_v41  ;;  %v2778_v41 = vld [vmem:[%s5884_s10 + $0x2a0] sm:$0xff]  ;;  %v2779_v42 = vld [vmem:[%s5884_s10 + $0x2a8] sm:$0xff] }
 0x172   :  { %4148 = vmatpush3.bf16.msra.mxu0 %v4147_v44  ;;  %v4213_v44 = vpack.c.bf16 %v2743_v38, %v2742_v37  ;;  %v2762_v38 = vld [vmem:[%s5884_s10 + $0x220] sm:$0xff] }
 0x173   :  { %4149 = vmatprep.subr.bf16.mxu0 %v4478_v3 }
 0x176   :  { %4151 = vmatpush3.bf16.msra.mxu0 %v4150_v62  ;;  %v2734_v62 = vld [vmem:[%s5884_s10 + $0x140] sm:$0xff] }
 0x177   :  { %4152 = vmatprep.subr.bf16.mxu0 %v4478_v3  ;;  %v4201_v4 = vpack.c.bf16 %v2735_v63, %v2734_v62  ;;  %v2785_v62 = vld [vmem:[%s5884_s10 + $0x2d8] sm:$0xff] }
 0x17a   :  { %4154 = vmatpush3.bf16.msra.mxu0 %v4153_v5  ;;  %v2736_v5 = vld [vmem:[%s5884_s10 + $0x150] sm:$0xff] }
 0x17b   :  { %4155 = vmatprep.subr.bf16.mxu0 %v4478_v3 }
 0x238   :  { %v850_v12 = vpop.f32.mrb[8].mxu0  ;;  %v932_v13 = vpop.f32.mrb[8].mxu1 }
 0x239   :  { %1012 = vperm.xlu0 %4390, %v932_v13   ;;  %v3506_v14 = vpop.f32.mrb[9].mxu0  ;;  %v3533_v15 = vpop.f32.mrb[9].mxu1  ;;  %3540 = vmatpush3.msra.mxu1 %v850_v12  ;;  %v4156_v12 = vpack.c.bf16 %v1144_v10, %v1143_v9  ;;  %v2720_v13 = vld [vmem:[%s5884_s10 + $0xd0] sm:$0xff]  ;;  %v2753_v9 = vld [vmem:[%s5884_s10 + $0x1d8] sm:$0xff]  ;;  %v4204_v10 = vpack.c.bf16 %v2737_v6, %v2736_v5  ;;  %v2787_v5 = vld [vmem:[%s5884_s10 + $0x2e8] sm:$0xff] }
 0x23a   :  { %4164 = vmatprep.subr.bf16.mxu1 %v4478_v3  ;;  %v2721_v14 = vld [vmem:[%s5884_s10 + $0xd8] sm:$0xff] }
 0x23b   :  { %4157 = vmatpush3.bf16.msra.mxu0 %v4156_v12  ;;  %v4180_v15 = vpack.c.bf16 %v2721_v14, %v2720_v13  ;;  %v2738_v12 = vld [vmem:[%s5884_s10 + $0x160] sm:$0xff]  ;;  %v2739_v13 = vld [vmem:[%s5884_s10 + $0x168] sm:$0xff] }
 0x23c   :  { %v1006_v16 = vpop.f32.mrb[10].mxu0  ;;  %4158 = vmatprep.subr.bf16.mxu0 %v4478_v3 }
 0x23d   :  { %v3538_v17 = vpop.f32.mrb[11].mxu0  ;;  %v1018_v21 = vrot.slane %v1006_v16, %v1017_v20  ;;  %v1145_v16 = vld [vmem:[%s5884_s10 + $0x60] sm:$0xff]  ;;  %v2723_v20 = vld [vmem:[%s5884_s10 + $0xe8] sm:$0xff] }
 0x23e   :  { %v1146_v17 = vld [vmem:[%s5884_s10 + $0x68] sm:$0xff] }
 0x23f   :  { %v4159_v18 = vpack.c.bf16 %v1146_v17, %v1145_v16  ;;  %v2755_v16 = vld [vmem:[%s5884_s10 + $0x1e8] sm:$0xff]  ;;  %v4207_v17 = vpack.c.bf16 %v2739_v13, %v2738_v12  ;;  %v2789_v12 = vld [vmem:[%s5884_s10 + $0x2f8] sm:$0xff] }
 0x241   :  { %4160 = vmatpush3.bf16.msra.mxu0 %v4159_v18  ;;  %v2740_v18 = vld [vmem:[%s5884_s10 + $0x170] sm:$0xff] }
 0x242   :  { %4161 = vmatprep.subr.bf16.mxu0 %v4478_v3 }
 0x2b8   :  { %v1013_v22 = vpop.permute.xlu0 %1012 }
 0x2b9   :  { %v1019_v24 = vadd.f32 %v1018_v21, %v1013_v22  ;;  %v4183_v21 = vpack.c.bf16 %v2723_v20, %v2722_v19  ;;  %v1147_v22 = vld [vmem:[%s5884_s10 + $0x70] sm:$0xff]  ;;  %v2741_v19 = vld [vmem:[%s5884_s10 + $0x178] sm:$0xff] }
 0x2bb   :  { %v1021_v25 = vmul.f32 0.2, %v1019_v24  ;;  %vm1020_vm3 = vcmp.gt.f32.partialorder %v1019_v24, 0.0 }
 0x2bd   :  { %v1022_v26 = vsel %vm1020_vm3, %v1019_v24, %v1021_v25  ;;  %v4162_v24 = vpack.c.bf16 %v1148_v23, %v1147_v22  ;;  %v2724_v25 = vld [vmem:[%s5884_s10 + $0xf0] sm:$0xff]  ;;  %v2757_v22 = vld [vmem:[%s5884_s10 + $0x1f8] sm:$0xff]  ;;  %v4210_v23 = vpack.c.bf16 %v2741_v19, %v2740_v18  ;;  %v2807_v18 = vld [vmem:[%s5884_s10 + $0x388] sm:$0xff] }
 0x2be   :  { %v1025_v27 = vsel %vm1024_vm4, %v1022_v26, -9e+15  ;;  %v2725_v26 = vld [vmem:[%s5884_s10 + $0xf8] sm:$0xff] }
 0x2bf   :  { %v1027_v28 = vsel %vm1026_vm5, %v1025_v27, -inf  ;;  %4163 = vmatpush3.bf16.msra.mxu0 %v4162_v24  ;;  %v2758_v24 = vld [vmem:[%s5884_s10 + $0x200] sm:$0xff] }
 0x2c0   :  { %1028 = vmax.xlane.f32.xlu0 %v1027_v28  ;;  %4188 = vmatprep.subr.bf16.mxu0 %v4478_v3 }
 0x34d   :  { %v1029_v29 = vpop.xlane.xlu0 %1028 }
 0x34e   :  { %v1030_v30 = vsub.f32 %v1025_v27, %v1029_v29  ;;  %v4186_v27 = vpack.c.bf16 %v2725_v26, %v2724_v25  ;;  %v2759_v25 = vld [vmem:[%s5884_s10 + $0x208] sm:$0xff] }
 0x350   :  { %v1031_v31 = vmul.f32 1.442695, %v1030_v30 }
 0x352   :  { %4392 = vpow2.f32 %v1031_v31 }
 0x35c   :  { %v4393_v32 = vpop.eup %4392 }
 0x35d   :  { %v1033_v33 = vsel %vm1026_vm5, %v4393_v32, 0.0 }
 0x35e   :  { %1034 = vadd.xlane.f32.xlu1 %v1033_v33  ;;  %v2727_v33 = vld [vmem:[%s5884_s10 + $0x108] sm:$0xff] }
 0x36f   :  { %1122 = vperm.xlu1 %4391, %v1118_v35  }
 0x3eb   :  { %v1035_v45 = vpop.xlane.xlu1 %1034 }
 0x3ec   :  { %4394 = vrcp.f32 %v1035_v45 }
 0x3ef   :  { %v5209_v47 = vpop.permute.xlu1 %1122 }
 0x3f0   :  { %v1125_v48 = vmul.f32 %v5209_v47, %v1119_v46  ;;  %v2744_v46 = vld [vmem:[%s5884_s10 + $0x190] sm:$0xff] }
 0x3f2   :  { %1129 = vrot.lane.b32.xlu1 %v1125_v48, %s4482_s6  ;;  %v2745_v48 = vld [vmem:[%s5884_s10 + $0x198] sm:$0xff] }
 0x3f6   :  { %v4395_v51 = vpop.eup %4394 }
 0x3f7   :  { %v1037_v53 = vmul.f32 %v4395_v51, %v4393_v32  ;;  %v2726_v32 = vld [vmem:[%s5884_s10 + $0x100] sm:$0xff]  ;;  %v2731_v51 = vld [vmem:[%s5884_s10 + $0x128] sm:$0xff] }
 0x3f8   :  { %v4189_v39 = vpack.c.bf16 %v2727_v33, %v2726_v32  ;;  %v4195_v55 = vpack.c.bf16 %v2731_v51, %v2730_v50  ;;  %v2761_v32 = vld [vmem:[%s5884_s10 + $0x218] sm:$0xff] }
 0x3f9   :  { %3542 = vmatmul.mubr.msk.f32.vlgmr.msra.gmra.mrb[10].mxu1 %vm1026_vm5, %v1037_v53  ;;  %v2746_v53 = vld [vmem:[%s5884_s10 + $0x1a0] sm:$0xff]  ;;  %v2781_v50 = vld [vmem:[%s5884_s10 + $0x2b8] sm:$0xff] }
 0x3fa   :  { %4166 = vmatpush3.bf16.msra.mxu1 %v4165_v52  ;;  %3611 = vmatprep.mubr.msk.f32.mxu1 %vm4479_vm0, %v4480_v11  ;;  %v4216_v52 = vpack.c.bf16 %v2745_v48, %v2744_v46  ;;  %v4219_v58 = vpack.c.bf16 %v2747_v54, %v2746_v53  ;;  %v2765_v46 = vld [vmem:[%s5884_s10 + $0x238] sm:$0xff]  ;;  %v4267_v48 = vpack.c.bf16 %v2779_v42, %v2778_v41  ;;  %v2767_v53 = vld [vmem:[%s5884_s10 + $0x248] sm:$0xff] }
 0x3fb   :  { %4167 = vmatprep.subr.bf16.mxu1 %v4478_v3  ;;  %v2799_v41 = vld [vmem:[%s5884_s10 + $0x348] sm:$0xff] }
 0x3fe   :  { %4169 = vmatpush3.bf16.msra.mxu1 %v4168_v56  ;;  %v2732_v56 = vld [vmem:[%s5884_s10 + $0x130] sm:$0xff] }
 0x3ff   :  { %4170 = vmatprep.subr.bf16.mxu1 %v4478_v3  ;;  %v4198_v61 = vpack.c.bf16 %v2733_v57, %v2732_v56  ;;  %v2783_v56 = vld [vmem:[%s5884_s10 + $0x2c8] sm:$0xff] }
 0x402   :  { %4172 = vmatpush3.bf16.msra.mxu1 %v4171_v59  ;;  %v2748_v59 = vld [vmem:[%s5884_s10 + $0x1b0] sm:$0xff] }
 0x403   :  { %4173 = vmatprep.subr.bf16.mxu1 %v4478_v3  ;;  %v4222_v0 = vpack.c.bf16 %v2749_v60, %v2748_v59  ;;  %v2769_v59 = vld [vmem:[%s5884_s10 + $0x258] sm:$0xff] }
 0x406   :  { %4175 = vmatpush3.bf16.msra.mxu1 %v4174_v1  ;;  %v2750_v1 = vld [vmem:[%s5884_s10 + $0x1c0] sm:$0xff] }
 0x407   :  { %4176 = vmatprep.subr.bf16.mxu1 %v4478_v3  ;;  %v4225_v7 = vpack.c.bf16 %v2751_v2, %v2750_v1  ;;  %v2771_v1 = vld [vmem:[%s5884_s10 + $0x268] sm:$0xff] }
 0x40a   :  { %4178 = vmatpush3.bf16.msra.mxu1 %v4177_v8  ;;  %v2752_v8 = vld [vmem:[%s5884_s10 + $0x1d0] sm:$0xff] }
 0x40b   :  { %4179 = vmatprep.subr.bf16.mxu1 %v4478_v3  ;;  %v4228_v14 = vpack.c.bf16 %v2753_v9, %v2752_v8  ;;  %v2773_v8 = vld [vmem:[%s5884_s10 + $0x278] sm:$0xff] }
 0x40e   :  { %4181 = vmatpush3.bf16.msra.mxu1 %v4180_v15  ;;  %v2754_v15 = vld [vmem:[%s5884_s10 + $0x1e0] sm:$0xff] }
 0x40f   :  { %4182 = vmatprep.subr.bf16.mxu1 %v4478_v3  ;;  %v4231_v20 = vpack.c.bf16 %v2755_v16, %v2754_v15  ;;  %v2791_v15 = vld [vmem:[%s5884_s10 + $0x308] sm:$0xff] }
 0x412   :  { %4184 = vmatpush3.bf16.msra.mxu1 %v4183_v21  ;;  %v2756_v21 = vld [vmem:[%s5884_s10 + $0x1f0] sm:$0xff] }
 0x413   :  { %4185 = vmatprep.subr.bf16.mxu1 %v4478_v3  ;;  %v4234_v26 = vpack.c.bf16 %v2757_v22, %v2756_v21  ;;  %v2792_v21 = vld [vmem:[%s5884_s10 + $0x310] sm:$0xff]  ;;  %v2793_v22 = vld [vmem:[%s5884_s10 + $0x318] sm:$0xff] }
 0x416   :  { %4187 = vmatpush3.bf16.msra.mxu1 %v4186_v27  ;;  %v2774_v27 = vld [vmem:[%s5884_s10 + $0x280] sm:$0xff] }
 0x417   :  { %4212 = vmatprep.subr.bf16.mxu1 %v4478_v3 }
 0x464   :  { %v1130_v36 = vpop.permute.xlu1 %1129 }
 0x4cc   :  { %v1107_v28 = vpop.f32.mrb[10].mxu1 }
 0x4cd   :  { %v1112_v29 = vmin.f32 %v1107_v28, 0.0  ;;  %v3543_v30 = vpop.f32.mrb[11].mxu1  ;;  %vm1111_vm6 = vcmp.gt.f32.partialorder %v1107_v28, 0.0 }
 0x4cf   :  { %v1113_v31 = vmul.f32 1.442695, %v1112_v29  ;;  %v4237_v29 = vpack.c.bf16 %v2759_v25, %v2758_v24  ;;  %v2808_v25 = vld [vmem:[%s5884_s10 + $0x390] sm:$0xff] }
 0x4d1   :  { %4396 = vpow2.f32 %v1113_v31  ;;  %v2760_v31 = vld [vmem:[%s5884_s10 + $0x210] sm:$0xff] }
 0x4d2   :  { %v4240_v37 = vpack.c.bf16 %v2761_v32, %v2760_v31  ;;  %v2810_v31 = vld [vmem:[%s5884_s10 + $0x3a0] sm:$0xff]  ;;  %v2811_v32 = vld [vmem:[%s5884_s10 + $0x3a8] sm:$0xff] }
 0x4db   :  { %v4397_v34 = vpop.eup %4396 }
 0x4dc   :  { %v2709_v35 = vadd.f32 -1.0, %v4397_v34 }
 0x4de   :  { %v1116_v40 = vsel %vm1111_vm6, %v1107_v28, %v2709_v35  ;;  %v2775_v28 = vld [vmem:[%s5884_s10 + $0x288] sm:$0xff]  ;;  %v2776_v35 = vld [vmem:[%s5884_s10 + $0x290] sm:$0xff] }
 0x4df   :  { %v5326_v43 = vsel %vm780_vm2, %v1116_v40, %v1130_v36  ;;  %v4261_v33 = vpack.c.bf16 %v2775_v28, %v2774_v27  ;;  %v2777_v36 = vld [vmem:[%s5884_s10 + $0x298] sm:$0xff]  ;;  %v4288_v27 = vpack.c.bf16 %v2793_v22, %v2792_v21  ;;  %v2794_v28 = vld [vmem:[%s5884_s10 + $0x320] sm:$0xff] }
 0x4e0   :  { %3577 = vmatmul.mubr.f32.vlgmr.msra.gmra.mrb[12].mxu0 %v5326_v43  ;;  %v1238_v45 = vrot.slane %v5326_v43, 1  ;;  %v1328_v30 = vrot.slane %v5326_v43, 2  ;;  %v1418_v34 = vrot.slane %v5326_v43, 3  ;;  %v4264_v40 = vpack.c.bf16 %v2777_v36, %v2776_v35  ;;  %v2797_v35 = vld [vmem:[%s5884_s10 + $0x338] sm:$0xff]  ;;  %v1852_v22 = vld [vmem:[%s5885_s11] sm:$0xff] }
 0x4e1   :  { %4190 = vmatpush3.bf16.msra.mxu0 %v4189_v39  ;;  %3646 = vmatprep.mubr.msk.f32.mxu0 %vm4479_vm0, %v4480_v11  ;;  %v2763_v39 = vld [vmem:[%s5884_s10 + $0x228] sm:$0xff]  ;;  %v1598_v24 = vrot.slane %v5326_v43, 5  ;;  %v4315_v36 = vpack.c.bf16 %v2811_v32, %v2810_v31 }
 0x4e2   :  { %3612 = vmatmul.mubr.f32.vlgmr.msra.gmra.mrb[12].mxu1 %v1238_v45  ;;  %4191 = vmatprep.subr.bf16.mxu0 %v4478_v3  ;;  %v2764_v45 = vld [vmem:[%s5884_s10 + $0x230] sm:$0xff] }
 0x4e3   :  { %4214 = vmatpush3.bf16.msra.mxu1 %v4213_v44  ;;  %3681 = vmatprep.mubr.msk.f32.mxu1 %vm4479_vm0, %v4480_v11  ;;  %v4243_v44 = vpack.c.bf16 %v2763_v39, %v2762_v38  ;;  %v4246_v51 = vpack.c.bf16 %v2765_v46, %v2764_v45  ;;  %v2813_v38 = vld [vmem:[%s5884_s10 + $0x3b8] sm:$0xff]  ;;  %v2815_v45 = vld [vmem:[%s5884_s10 + $0x3c8] sm:$0xff] }
 0x4e4   :  { %4215 = vmatprep.subr.bf16.mxu1 %v4478_v3 }
 0x4e5   :  { %4193 = vmatpush3.bf16.msra.mxu0 %v4192_v49  ;;  %v2780_v49 = vld [vmem:[%s5884_s10 + $0x2b0] sm:$0xff] }
 0x4e6   :  { %4194 = vmatprep.subr.bf16.mxu0 %v4478_v3  ;;  %v4270_v54 = vpack.c.bf16 %v2781_v50, %v2780_v49  ;;  %v2801_v49 = vld [vmem:[%s5884_s10 + $0x358] sm:$0xff] }
 0x4e7   :  { %4217 = vmatpush3.bf16.msra.mxu1 %v4216_v52  ;;  %v2766_v52 = vld [vmem:[%s5884_s10 + $0x240] sm:$0xff] }
 0x4e8   :  { %4218 = vmatprep.subr.bf16.mxu1 %v4478_v3  ;;  %v4249_v57 = vpack.c.bf16 %v2767_v53, %v2766_v52  ;;  %v2817_v52 = vld [vmem:[%s5884_s10 + $0x3d8] sm:$0xff] }
 0x4e9   :  { %4196 = vmatpush3.bf16.msra.mxu0 %v4195_v55  ;;  %v2782_v55 = vld [vmem:[%s5884_s10 + $0x2c0] sm:$0xff] }
 0x4ea   :  { %4197 = vmatprep.subr.bf16.mxu0 %v4478_v3  ;;  %v4273_v60 = vpack.c.bf16 %v2783_v56, %v2782_v55  ;;  %v2803_v55 = vld [vmem:[%s5884_s10 + $0x368] sm:$0xff] }
 0x4eb   :  { %4220 = vmatpush3.bf16.msra.mxu1 %v4219_v58  ;;  %v2768_v58 = vld [vmem:[%s5884_s10 + $0x250] sm:$0xff] }
 0x4ec   :  { %4221 = vmatprep.subr.bf16.mxu1 %v4478_v3  ;;  %v4252_v63 = vpack.c.bf16 %v2769_v59, %v2768_v58  ;;  %v2819_v58 = vld [vmem:[%s5884_s10 + $0x3e8] sm:$0xff] }
 0x4ed   :  { %4199 = vmatpush3.bf16.msra.mxu0 %v4198_v61  ;;  %v2784_v61 = vld [vmem:[%s5884_s10 + $0x2d0] sm:$0xff] }
 0x4ee   :  { %4200 = vmatprep.subr.bf16.mxu0 %v4478_v3  ;;  %v4276_v2 = vpack.c.bf16 %v2785_v62, %v2784_v61  ;;  %v2805_v61 = vld [vmem:[%s5884_s10 + $0x378] sm:$0xff] }
 0x4ef   :  { %4223 = vmatpush3.bf16.msra.mxu1 %v4222_v0  ;;  %v2770_v0 = vld [vmem:[%s5884_s10 + $0x260] sm:$0xff] }
 0x4f0   :  { %4224 = vmatprep.subr.bf16.mxu1 %v4478_v3  ;;  %v4255_v6 = vpack.c.bf16 %v2771_v1, %v2770_v0  ;;  %v2821_v0 = vld [vmem:[%s5884_s10 + $0x3f8] sm:$0xff] }
 0x4f1   :  { %4202 = vmatpush3.bf16.msra.mxu0 %v4201_v4  ;;  %v2786_v4 = vld [vmem:[%s5884_s10 + $0x2e0] sm:$0xff] }
 0x4f2   :  { %4203 = vmatprep.subr.bf16.mxu0 %v4478_v3  ;;  %v4279_v9 = vpack.c.bf16 %v2787_v5, %v2786_v4  ;;  %v1688_v4 = vrot.slane %v5326_v43, 6  ;;  %v1778_v5 = vrot.slane %v5326_v43, 7 }
 0x4f3   :  { %4226 = vmatpush3.bf16.msra.mxu1 %v4225_v7  ;;  %v2772_v7 = vld [vmem:[%s5884_s10 + $0x270] sm:$0xff] }
 0x4f4   :  { %4227 = vmatprep.subr.bf16.mxu1 %v4478_v3  ;;  %v4258_v13 = vpack.c.bf16 %v2773_v8, %v2772_v7 }
 0x4f5   :  { %4205 = vmatpush3.bf16.msra.mxu0 %v4204_v10  ;;  %v2788_v10 = vld [vmem:[%s5884_s10 + $0x2f0] sm:$0xff] }
 0x4f6   :  { %4206 = vmatprep.subr.bf16.mxu0 %v4478_v3  ;;  %v4282_v16 = vpack.c.bf16 %v2789_v12, %v2788_v10 }
 0x4f7   :  { %4229 = vmatpush3.bf16.msra.mxu1 %v4228_v14  ;;  %v2790_v14 = vld [vmem:[%s5884_s10 + $0x300] sm:$0xff] }
 0x4f8   :  { %4230 = vmatprep.subr.bf16.mxu1 %v4478_v3  ;;  %v4285_v19 = vpack.c.bf16 %v2791_v15, %v2790_v14 }
 0x4f9   :  { %4208 = vmatpush3.bf16.msra.mxu0 %v4207_v17  ;;  %v2806_v17 = vld [vmem:[%s5884_s10 + $0x380] sm:$0xff] }
 0x4fa   :  { %4209 = vmatprep.subr.bf16.mxu0 %v4478_v3 }
 0x4fb   :  { %4232 = vmatpush3.bf16.msra.mxu1 %v4231_v20  ;;  %v1508_v20 = vrot.slane %v5326_v43, 4 }
 0x4fc   :  { %4233 = vmatprep.subr.bf16.mxu1 %v4478_v3 }
 0x4fd   :  { %4211 = vmatpush3.bf16.msra.mxu0 %v4210_v23  ;;  %v4309_v23 = vpack.c.bf16 %v2807_v18, %v2806_v17 }
 0x4fe   :  { %4236 = vmatprep.subr.bf16.mxu0 %v4478_v3 }
 0x4ff   :  { %4235 = vmatpush3.bf16.msra.mxu1 %v4234_v26  ;;  %v2809_v26 = vld [vmem:[%s5884_s10 + $0x398] sm:$0xff] }
 0x500   :  { %3647 = vmatmul.mubr.f32.vlgmr.msra.gmra.mrb[14].mxu0 %v1328_v30  ;;  %4260 = vmatprep.subr.bf16.mxu1 %v4478_v3  ;;  %v4312_v30 = vpack.c.bf16 %v2809_v26, %v2808_v25  ;;  %v1126_v26 = vld [vmem:[%s5877_s3] sm:$0xff] }
 0x501   :  { %4238 = vmatpush3.bf16.msra.mxu0 %v4237_v29  ;;  %3716 = vmatprep.mubr.msk.f32.mxu0 %vm4479_vm0, %v4480_v11  ;;  %v2795_v29 = vld [vmem:[%s5884_s10 + $0x328] sm:$0xff] }
 0x502   :  { %3682 = vmatmul.mubr.f32.vlgmr.msra.gmra.mrb[14].mxu1 %v1418_v34  ;;  %4239 = vmatprep.subr.bf16.mxu0 %v4478_v3  ;;  %v2796_v34 = vld [vmem:[%s5884_s10 + $0x330] sm:$0xff] }
 0x503   :  { %4262 = vmatpush3.bf16.msra.mxu1 %v4261_v33  ;;  %3751 = vmatprep.mubr.msk.f32.mxu1 %vm4479_vm0, %v4480_v11  ;;  %v4291_v33 = vpack.c.bf16 %v2795_v29, %v2794_v28  ;;  %v4294_v39 = vpack.c.bf16 %v2797_v35, %v2796_v34 }
 0x504   :  { %4263 = vmatprep.subr.bf16.mxu1 %v4478_v3 }
 0x505   :  { %4241 = vmatpush3.bf16.msra.mxu0 %v4240_v37  ;;  %v2812_v37 = vld [vmem:[%s5884_s10 + $0x3b0] sm:$0xff] }
 0x506   :  { %4242 = vmatprep.subr.bf16.mxu0 %v4478_v3  ;;  %v4318_v42 = vpack.c.bf16 %v2813_v38, %v2812_v37  ;;  %v1880_v38 = vld [vmem:[%s5886_s12] sm:$0xff] }
 0x507   :  { %4265 = vmatpush3.bf16.msra.mxu1 %v4264_v40  ;;  %v2798_v40 = vld [vmem:[%s5884_s10 + $0x340] sm:$0xff] }
 0x508   :  { %4266 = vmatprep.subr.bf16.mxu1 %v4478_v3  ;;  %v4297_v46 = vpack.c.bf16 %v2799_v41, %v2798_v40  ;;  %v1882_v40 = vld [vmem:[%s5886_s12 + $0x10] sm:$0xff] }
 0x509   :  { %4244 = vmatpush3.bf16.msra.mxu0 %v4243_v44  ;;  %v2814_v44 = vld [vmem:[%s5884_s10 + $0x3c0] sm:$0xff] }
 0x50a   :  { %4245 = vmatprep.subr.bf16.mxu0 %v4478_v3  ;;  %v4321_v50 = vpack.c.bf16 %v2815_v45, %v2814_v44  ;;  %v2823_v44 = vld [vmem:[%s5886_s12 + $0x20] sm:$0xff]  ;;  %v2824_v45 = vld [vmem:[%s5886_s12 + $0x28] sm:$0xff] }
 0x50b   :  { %4268 = vmatpush3.bf16.msra.mxu1 %v4267_v48  ;;  %v2800_v48 = vld [vmem:[%s5884_s10 + $0x350] sm:$0xff] }
 0x50c   :  { %4269 = vmatprep.subr.bf16.mxu1 %v4478_v3  ;;  %v4300_v53 = vpack.c.bf16 %v2801_v49, %v2800_v48  ;;  %v2825_v49 = vld [vmem:[%s5886_s12 + $0x30] sm:$0xff] }
 0x50d   :  { %4247 = vmatpush3.bf16.msra.mxu0 %v4246_v51  ;;  %v2816_v51 = vld [vmem:[%s5884_s10 + $0x3d0] sm:$0xff] }
 0x50e   :  { %4248 = vmatprep.subr.bf16.mxu0 %v4478_v3  ;;  %v4324_v56 = vpack.c.bf16 %v2817_v52, %v2816_v51 }
 0x50f   :  { %4271 = vmatpush3.bf16.msra.mxu1 %v4270_v54  ;;  %v2802_v54 = vld [vmem:[%s5884_s10 + $0x360] sm:$0xff] }
 0x510   :  { %4272 = vmatprep.subr.bf16.mxu1 %v4478_v3  ;;  %v4303_v59 = vpack.c.bf16 %v2803_v55, %v2802_v54 }
 0x511   :  { %4250 = vmatpush3.bf16.msra.mxu0 %v4249_v57  ;;  %v2818_v57 = vld [vmem:[%s5884_s10 + $0x3e0] sm:$0xff] }
 0x512   :  { %4251 = vmatprep.subr.bf16.mxu0 %v4478_v3  ;;  %v4327_v62 = vpack.c.bf16 %v2819_v58, %v2818_v57 }
 0x513   :  { %4274 = vmatpush3.bf16.msra.mxu1 %v4273_v60  ;;  %v2804_v60 = vld [vmem:[%s5884_s10 + $0x370] sm:$0xff] }
 0x514   :  { %4275 = vmatprep.subr.bf16.mxu1 %v4478_v3  ;;  %v4306_v1 = vpack.c.bf16 %v2805_v61, %v2804_v60  ;;  %v2828_v61 = vld [vmem:[%s5886_s12 + $0x40] sm:$0xff] }
 0x515   :  { %4253 = vmatpush3.bf16.msra.mxu0 %v4252_v63  ;;  %v2820_v63 = vld [vmem:[%s5884_s10 + $0x3f0] sm:$0xff] }
 0x516   :  { %4254 = vmatprep.subr.bf16.mxu0 %v4478_v3 }
 0x517   :  { %4277 = vmatpush3.bf16.msra.mxu1 %v4276_v2  ;;  %v4330_v2 = vpack.c.bf16 %v2821_v0, %v2820_v63  ;;  %v2830_v0 = vld [vmem:[%s5886_s12 + $0x50] sm:$0xff] }
 0x518   :  { %4278 = vmatprep.subr.bf16.mxu1 %v4478_v3 }
 0x519   :  { %4256 = vmatpush3.bf16.msra.mxu0 %v4255_v6 }
 0x51a   :  { %4257 = vmatprep.subr.bf16.mxu0 %v4478_v3 }
 0x51b   :  { %4280 = vmatpush3.bf16.msra.mxu1 %v4279_v9 }
 0x51c   :  { %4281 = vmatprep.subr.bf16.mxu1 %v4478_v3 }
 0x51d   :  { %4259 = vmatpush3.bf16.msra.mxu0 %v4258_v13 }
 0x51e   :  { %4284 = vmatprep.subr.bf16.mxu0 %v4478_v3 }
 0x51f   :  { %4283 = vmatpush3.bf16.msra.mxu1 %v4282_v16 }
 0x520   :  { %3717 = vmatmul.mubr.f32.vlgmr.msra.gmra.mrb[16].mxu0 %v1508_v20  ;;  %4308 = vmatprep.subr.bf16.mxu1 %v4478_v3 }
 0x521   :  { %4286 = vmatpush3.bf16.msra.mxu0 %v4285_v19  ;;  %3786 = vmatprep.mubr.msk.f32.mxu0 %vm4479_vm0, %v4480_v11 }
 0x522   :  { %3752 = vmatmul.mubr.f32.vlgmr.msra.gmra.mrb[16].mxu1 %v1598_v24  ;;  %4287 = vmatprep.subr.bf16.mxu0 %v4478_v3 }
 0x523   :  { %4310 = vmatpush3.bf16.msra.mxu1 %v4309_v23  ;;  %3821 = vmatprep.mubr.msk.f32.mxu1 %vm4479_vm0, %v4480_v11 }
 0x524   :  { %4311 = vmatprep.subr.bf16.mxu1 %v4478_v3 }
 0x525   :  { %4289 = vmatpush3.bf16.msra.mxu0 %v4288_v27  ;;  %v1127_v27 = vmul.f32 %v1126_v26, %v5209_v47 }
 0x526   :  { %4290 = vmatprep.subr.bf16.mxu0 %v4478_v3 }
 0x527   :  { %4313 = vmatpush3.bf16.msra.mxu1 %v4312_v30 }
 0x528   :  { %4314 = vmatprep.subr.bf16.mxu1 %v4478_v3 }
 0x529   :  { %4292 = vmatpush3.bf16.msra.mxu0 %v4291_v33 }
 0x52a   :  { %4293 = vmatprep.subr.bf16.mxu0 %v4478_v3 }
 0x52b   :  { %4316 = vmatpush3.bf16.msra.mxu1 %v4315_v36 }
 0x52c   :  { %4317 = vmatprep.subr.bf16.mxu1 %v4478_v3 }
 0x52d   :  { %4295 = vmatpush3.bf16.msra.mxu0 %v4294_v39  ;;  %v1881_v39 = vld [vmem:[%s5886_s12 + $0x8] sm:$0xff] }
 0x52e   :  { %4296 = vmatprep.subr.bf16.mxu0 %v4478_v3  ;;  %v4333_v41 = vpack.c.bf16 %v1881_v39, %v1880_v38 }
 0x52f   :  { %4319 = vmatpush3.bf16.msra.mxu1 %v4318_v42  ;;  %v1883_v42 = vld [vmem:[%s5886_s12 + $0x18] sm:$0xff] }
 0x530   :  { %4320 = vmatprep.subr.bf16.mxu1 %v4478_v3  ;;  %v4336_v48 = vpack.c.bf16 %v1883_v42, %v1882_v40 }
 0x531   :  { %4298 = vmatpush3.bf16.msra.mxu0 %v4297_v46  ;;  %v4339_v46 = vpack.c.bf16 %v2824_v45, %v2823_v44 }
 0x532   :  { %4299 = vmatprep.subr.bf16.mxu0 %v4478_v3 }
 0x533   :  { %4322 = vmatpush3.bf16.msra.mxu1 %v4321_v50  ;;  %v2826_v50 = vld [vmem:[%s5886_s12 + $0x38] sm:$0xff] }
 0x534   :  { %4323 = vmatprep.subr.bf16.mxu1 %v4478_v3  ;;  %v4342_v51 = vpack.c.bf16 %v2826_v50, %v2825_v49 }
 0x535   :  { %4301 = vmatpush3.bf16.msra.mxu0 %v4300_v53 }
 0x536   :  { %4302 = vmatprep.subr.bf16.mxu0 %v4478_v3 }
 0x537   :  { %4325 = vmatpush3.bf16.msra.mxu1 %v4324_v56 }
 0x538   :  { %4326 = vmatprep.subr.bf16.mxu1 %v4478_v3 }
 0x539   :  { %4304 = vmatpush3.bf16.msra.mxu0 %v4303_v59 }
 0x53a   :  { %4305 = vmatprep.subr.bf16.mxu0 %v4478_v3 }
 0x53b   :  { %4328 = vmatpush3.bf16.msra.mxu1 %v4327_v62  ;;  %v2829_v62 = vld [vmem:[%s5886_s12 + $0x48] sm:$0xff] }
 0x53c   :  { %4329 = vmatprep.subr.bf16.mxu1 %v4478_v3  ;;  %v4345_v63 = vpack.c.bf16 %v2829_v62, %v2828_v61 }
 0x53d   :  { %4307 = vmatpush3.bf16.msra.mxu0 %v4306_v1  ;;  %v2831_v1 = vld [vmem:[%s5886_s12 + $0x58] sm:$0xff] }
 0x53e   :  { %4332 = vmatprep.subr.bf16.mxu0 %v4478_v3 }
 0x53f   :  { %4331 = vmatpush3.bf16.msra.mxu1 %v4330_v2  ;;  %v2833_v2 = vld [vmem:[%s5886_s12 + $0x60] sm:$0xff] }
 0x540   :  { %3787 = vmatmul.mubr.f32.vlgmr.msra.gmra.mrb[18].mxu0 %v1688_v4  ;;  %4338 = vmatprep.subr.bf16.mxu1 %v4478_v3  ;;  %v2834_v4 = vld [vmem:[%s5886_s12 + $0x68] sm:$0xff] }
 0x541   :  { %3832 = vmatprep.mubr.msk.f32.mxu0 %vm4479_vm0, %v4480_v11  ;;  %4334 = vmatpush3.bf16.msra.mxu0 %v4333_v41 }
 0x542   :  { %3822 = vmatmul.mubr.f32.vlgmr.msra.gmra.mrb[18].mxu1 %v1778_v5  ;;  %4335 = vmatprep.subr.bf16.mxu0 %v4478_v3 }
 0x543   :  { %3843 = vmatprep.mubr.msk.f32.mxu1 %vm4479_vm0, %v4480_v11  ;;  %4340 = vmatpush3.bf16.msra.mxu1 %v4339_v46 }
 0x544   :  { %4341 = vmatprep.subr.bf16.mxu1 %v4478_v3 }
 0x545   :  { %4337 = vmatpush3.bf16.msra.mxu0 %v4336_v48 }
 0x546   :  { %4344 = vmatprep.subr.bf16.mxu0 %v4478_v3 }
 0x547   :  { %4343 = vmatpush3.bf16.msra.mxu1 %v4342_v51 }
 0x548   :  { %4350 = vmatprep.subr.bf16.mxu1 %v4478_v3 }
 0x5b3   :  { %v1215_v6 = vpop.f32.mrb[12].mxu0 }
 0x5b4   :  { %1219 = vst [vmem:[#allocation3] sm:$0x1] %v1215_v6  ;;  %v3578_v7 = vpop.f32.mrb[13].mxu0  ;;  %v4348_v6 = vpack.c.bf16 %v2831_v1, %v2830_v0 }
 0x5b5   :  { %v1306_v8 = vpop.f32.mrb[12].mxu1  ;;  %v4351_v7 = vpack.c.bf16 %v2834_v4, %v2833_v2 }
 0x5b6   :  { %1310 = vst [vmem:[#allocation3 + $0x1] sm:$0x1] %v1306_v8  ;;  %v3613_v9 = vpop.f32.mrb[13].mxu1  ;;  %v2835_v8 = vld [vmem:[%s5886_s12 + $0x70] sm:$0xff] }
 0x5b7   :  { %v2836_v9 = vld [vmem:[%s5886_s12 + $0x78] sm:$0xff] }
 0x5d3   :  { %v1396_v10 = vpop.f32.mrb[14].mxu0 }
 0x5d4   :  { %1400 = vst [vmem:[#allocation3 + $0x2] sm:$0x1] %v1396_v10  ;;  %v3648_v12 = vpop.f32.mrb[15].mxu0  ;;  %v2838_v10 = vld [vmem:[%s5886_s12 + $0x80] sm:$0xff] }
 0x5d5   :  { %v1486_v13 = vpop.f32.mrb[14].mxu1  ;;  %v2839_v12 = vld [vmem:[%s5886_s12 + $0x88] sm:$0xff] }
 0x5d6   :  { %1490 = vst [vmem:[#allocation3 + $0x3] sm:$0x1] %v1486_v13  ;;  %v3683_v43 = vpop.f32.mrb[15].mxu1 }
 0x5d7   :  { %v4354_v43 = vpack.c.bf16 %v2836_v9, %v2835_v8 }
 0x5f3   :  { %v1576_v14 = vpop.f32.mrb[16].mxu0 }
 0x5f4   :  { %1580 = vst [vmem:[#allocation3 + $0x4] sm:$0x1] %v1576_v14  ;;  %v3718_v15 = vpop.f32.mrb[17].mxu0  ;;  %v4357_v14 = vpack.c.bf16 %v2839_v12, %v2838_v10 }
 0x5f5   :  { %v1666_v16 = vpop.f32.mrb[16].mxu1  ;;  %v2840_v15 = vld [vmem:[%s5886_s12 + $0x90] sm:$0xff] }
 0x5f6   :  { %1670 = vst [vmem:[#allocation3 + $0x5] sm:$0x1] %v1666_v16  ;;  %v3753_v17 = vpop.f32.mrb[17].mxu1  ;;  %v2841_v16 = vld [vmem:[%s5886_s12 + $0x98] sm:$0xff] }
 0x5f7   :  { %v2843_v17 = vld [vmem:[%s5886_s12 + $0xa0] sm:$0xff] }
 0x613   :  { %v1756_v18 = vpop.f32.mrb[18].mxu0 }
 0x614   :  { %1760 = vst [vmem:[#allocation3 + $0x6] sm:$0x1] %v1756_v18  ;;  %v3788_v19 = vpop.f32.mrb[19].mxu0  ;;  %v2844_v18 = vld [vmem:[%s5886_s12 + $0xa8] sm:$0xff] }
 0x615   :  { %v1846_v20 = vpop.f32.mrb[18].mxu1 }
 0x616   :  { %1850 = vst [vmem:[#allocation3 + $0x7] sm:$0x1] %v1846_v20  ;;  %v3823_v21 = vpop.f32.mrb[19].mxu1  ;;  %v4360_v20 = vpack.c.bf16 %v2841_v16, %v2840_v15 }
 0x617   :  { %v4363_v21 = vpack.c.bf16 %v2844_v18, %v2843_v17 }
 0x61d   :  { %v1851_v23 = vld [vmem:[#allocation3] sm:$0xff] }
 0x61e   :  { %v1853_v24 = vadd.f32 %v1852_v22, %v1851_v23  ;;  %v2845_v22 = vld [vmem:[%s5886_s12 + $0xb0] sm:$0xff]  ;;  %v2846_v23 = vld [vmem:[%s5886_s12 + $0xb8] sm:$0xff] }
 0x620   :  { %4398 = vtanh.f32 %v1853_v24  ;;  %v1854_v28 = vmul.f32 0.5, %v1853_v24  ;;  %v2848_v24 = vld [vmem:[%s5886_s12 + $0xc0] sm:$0xff] }
 0x622   :  { %4400 = vtanh.f32 %v1854_v28 }
 0x62a   :  { %v4399_v25 = vpop.eup %4398 }
 0x62b   :  { %1865 = vrot.lane.b32.xlu1 %v4399_v25, %s4483_s2  ;;  %v2849_v25 = vld [vmem:[%s5886_s12 + $0xc8] sm:$0xff] }
 0x62c   :  { %v4401_v29 = vpop.eup %4400  ;;  %v4369_v28 = vpack.c.bf16 %v2849_v25, %v2848_v24 }
 0x62d   :  { %v1856_v30 = vadd.f32 1.0, %v4401_v29  ;;  %v2850_v29 = vld [vmem:[%s5886_s12 + $0xd0] sm:$0xff] }
 0x62f   :  { %1860 = vrot.lane.b32.xlu1 %v1127_v27, %s4484_s24  ;;  %v1857_v31 = vmul.f32 0.5, %v1856_v30  ;;  %v4366_v27 = vpack.c.bf16 %v2846_v23, %v2845_v22  ;;  %v2851_v30 = vld [vmem:[%s5886_s12 + $0xd8] sm:$0xff] }
 0x69d   :  { %v1866_v32 = vpop.permute.xlu1 %1865 }
 0x69e   :  { %v1868_v33 = vmul.f32 %v1866_v32, %v1857_v31  ;;  %v2854_v32 = vld [vmem:[%s5886_s12 + $0xe8] sm:$0xff] }
 0x6a0   :  { %1870 = vrot.lane.b32.xlu1 %v1868_v33, %s4484_s24 }
 0x6a1   :  { %v1861_v34 = vpop.permute.xlu1 %1860 }
 0x6a2   :  { %v1863_v35 = vmul.f32 %v1861_v34, %v1857_v31  ;;  %v4372_v34 = vpack.c.bf16 %v2851_v30, %v2850_v29 }
 0x712   :  { %v1871_v36 = vpop.permute.xlu1 %1870 }
 0x713   :  { %v5679_v37 = vadd.f32 %v1871_v36, %v1863_v35  ;;  %v2855_v36 = vld [vmem:[%s5886_s12 + $0xf0] sm:$0xff] }
 0x715   :  { %4402 = vtanh.f32 %v5679_v37 }
 0x71f   :  { %v4403_v47 = vpop.eup %4402 }
 0x720   :  { %1876 = vrot.lane.b32.xlu0 %v4403_v47, %s4483_s2  ;;  %v2856_v47 = vld [vmem:[%s5886_s12 + $0xf8] sm:$0xff] }
 0x721   :  { %v4378_v39 = vpack.c.bf16 %v2856_v47, %v2855_v36 }
 0x792   :  { %v1877_v52 = vpop.permute.xlu0 %1876 }
 0x793   :  { %v1879_v53 = vmul.f32 %v1877_v52, %v1857_v31  ;;  %v2853_v31 = vld [vmem:[%s5886_s12 + $0xe0] sm:$0xff] }
 0x794   :  { %v4375_v35 = vpack.c.bf16 %v2854_v32, %v2853_v31 }
 0x795   :  { %1885 = vrot.lane.b32.xlu1 %v1879_v53, %s4484_s24  ;;  %v2291_v54 = vrot.slane %v1879_v53, 5  ;;  %v1967_v55 = vrot.slane %v1879_v53, 1  ;;  %v2453_v56 = vrot.slane %v1879_v53, 7  ;;  %v2048_v57 = vrot.slane %v1879_v53, 2 }
 0x796   :  { %v2129_v58 = vrot.slane %v1879_v53, 3  ;;  %v2210_v59 = vrot.slane %v1879_v53, 4  ;;  %v2372_v60 = vrot.slane %v1879_v53, 6 }
 0x797   :  { %2292 = vrot.lane.b32.xlu0 %v2291_v54, %s4484_s24 }
 0x799   :  { %1968 = vrot.lane.b32.xlu1 %v1967_v55, %s4484_s24 }
 0x79b   :  { %2454 = vrot.lane.b32.xlu0 %v2453_v56, %s4484_s24 }
 0x79d   :  { %2049 = vrot.lane.b32.xlu1 %v2048_v57, %s4484_s24 }
 0x7a1   :  { %2130 = vrot.lane.b32.xlu1 %v2129_v58, %s4484_s24  ;;  %v2530_v58 = vld [vmem:[%s5887_s13] sm:$0xff] }
 0x7a5   :  { %2211 = vrot.lane.b32.xlu1 %v2210_v59, %s4484_s24 }
 0x7a9   :  { %2373 = vrot.lane.b32.xlu1 %v2372_v60, %s4484_s24 }
 0x807   :  { %v1886_v5 = vpop.permute.xlu1 %1885 }
 0x808   :  { %3833 = vmatmul.mubr.msk.f32.vlgmr.msra.gmra.mrb[20].mxu0 %vm1887_vm7, %v1886_v5  ;;  %2545 = vst.msk [vmem:[#allocation7] sm:$0xff] %vm1887_vm7, %v1886_v5 }
 0x809   :  { %4346 = vmatpush3.bf16.msra.mxu0 %v4345_v63  ;;  %3854 = vmatprep.mubr.msk.f32.mxu0 %vm4479_vm0, %v4480_v11  ;;  %v2293_v38 = vpop.permute.xlu0 %2292 }
 0x80a   :  { %4347 = vmatprep.subr.bf16.mxu0 %v4478_v3 }
 0x80b   :  { %v1969_v13 = vpop.permute.xlu1 %1968 }
 0x80c   :  { %3844 = vmatmul.mubr.msk.f32.vlgmr.msra.gmra.mrb[20].mxu1 %vm1887_vm7, %v1969_v13 }
 0x80d   :  { %4349 = vmatpush3.bf16.msra.mxu0 %v4348_v6  ;;  %4352 = vmatpush3.bf16.msra.mxu1 %v4351_v7  ;;  %v2455_v41 = vpop.permute.xlu0 %2454 }
 0x80e   :  { %4353 = vmatprep.subr.bf16.mxu1 %v4478_v3  ;;  %4356 = vmatprep.subr.bf16.mxu0 %v4478_v3 }
 0x80f   :  { %v2050_v19 = vpop.permute.xlu1 %2049  ;;  %3865 = vmatprep.mubr.msk.f32.mxu1 %vm4479_vm0, %v4480_v11 }
 0x810   :  { %3855 = vmatmul.mubr.msk.f32.vlgmr.msra.gmra.mrb[22].mxu0 %vm1887_vm7, %v2050_v19 }
 0x811   :  { %4355 = vmatpush3.bf16.msra.mxu1 %v4354_v43  ;;  %4358 = vmatpush3.bf16.msra.mxu0 %v4357_v14 }
 0x812   :  { %4359 = vmatprep.subr.bf16.mxu0 %v4478_v3  ;;  %4362 = vmatprep.subr.bf16.mxu1 %v4478_v3 }
 0x813   :  { %v2131_v26 = vpop.permute.xlu1 %2130  ;;  %3876 = vmatprep.mubr.msk.f32.mxu0 %vm4479_vm0, %v4480_v11 }
 0x814   :  { %3866 = vmatmul.mubr.msk.f32.vlgmr.msra.gmra.mrb[22].mxu1 %vm1887_vm7, %v2131_v26 }
 0x815   :  { %4361 = vmatpush3.bf16.msra.mxu0 %v4360_v20  ;;  %4364 = vmatpush3.bf16.msra.mxu1 %v4363_v21 }
 0x816   :  { %4365 = vmatprep.subr.bf16.mxu1 %v4478_v3  ;;  %4368 = vmatprep.subr.bf16.mxu0 %v4478_v3 }
 0x817   :  { %v2212_v33 = vpop.permute.xlu1 %2211  ;;  %3887 = vmatprep.mubr.msk.f32.mxu1 %vm4479_vm0, %v4480_v11 }
 0x818   :  { %3877 = vmatmul.mubr.msk.f32.vlgmr.msra.gmra.mrb[24].mxu0 %vm1887_vm7, %v2212_v33 }
 0x819   :  { %4367 = vmatpush3.bf16.msra.mxu1 %v4366_v27  ;;  %4370 = vmatpush3.bf16.msra.mxu0 %v4369_v28 }
 0x81a   :  { %4371 = vmatprep.subr.bf16.mxu0 %v4478_v3  ;;  %4374 = vmatprep.subr.bf16.mxu1 %v4478_v3 }
 0x81b   :  { %3898 = vmatprep.mubr.msk.f32.mxu0 %vm4479_vm0, %v4480_v11  ;;  %v2374_v40 = vpop.permute.xlu1 %2373 }
 0x81c   :  { %3888 = vmatmul.mubr.msk.f32.vlgmr.msra.gmra.mrb[24].mxu1 %vm1887_vm7, %v2293_v38 }
 0x81d   :  { %4373 = vmatpush3.bf16.msra.mxu0 %v4372_v34  ;;  %4376 = vmatpush3.bf16.msra.mxu1 %v4375_v35 }
 0x81e   :  { %4377 = vmatprep.subr.bf16.mxu1 %v4478_v3  ;;  %3909 = vmatprep.mubr.msk.f32.mxu1 %vm4479_vm0, %v4480_v11 }
 0x820   :  { %3899 = vmatmul.mubr.msk.f32.vlgmr.msra.gmra.mrb[26].mxu0 %vm1887_vm7, %v2374_v40 }
 0x821   :  { %4379 = vmatpush3.bf16.msra.mxu1 %v4378_v39 }
 0x824   :  { %3910 = vmatmul.mubr.msk.f32.vlgmr.msra.gmra.mrb[26].mxu1 %vm1887_vm7, %v2455_v41 }
 0x8db   :  { %v1956_v42 = vpop.f32.mrb[20].mxu0 }
 0x8dc   :  { %1961 = vst.msk [vmem:[#allocation4] sm:$0x1] %vm1960_vm8, %v1956_v42  ;;  %v3834_v44 = vpop.f32.mrb[21].mxu0 }
 0x8df   :  { %v2038_v45 = vpop.f32.mrb[20].mxu1 }
 0x8e0   :  { %2042 = vst.msk [vmem:[#allocation4 + $0x1] sm:$0x1] %vm1960_vm8, %v2038_v45  ;;  %v3845_v46 = vpop.f32.mrb[21].mxu1 }
 0x8e3   :  { %v2119_v3 = vpop.f32.mrb[22].mxu0 }
 0x8e4   :  { %2123 = vst.msk [vmem:[#allocation4 + $0x2] sm:$0x1] %vm1960_vm8, %v2119_v3  ;;  %v3856_v11 = vpop.f32.mrb[23].mxu0 }
 0x8e7   :  { %v2200_v48 = vpop.f32.mrb[22].mxu1 }
 0x8e8   :  { %2204 = vst.msk [vmem:[#allocation4 + $0x3] sm:$0x1] %vm1960_vm8, %v2200_v48  ;;  %v3867_v49 = vpop.f32.mrb[23].mxu1 }
 0x8eb   :  { %v2281_v50 = vpop.f32.mrb[24].mxu0 }
 0x8ec   :  { %2285 = vst.msk [vmem:[#allocation4 + $0x4] sm:$0x1] %vm1960_vm8, %v2281_v50  ;;  %v3878_v51 = vpop.f32.mrb[25].mxu0 }
 0x8ef   :  { %v2362_v52 = vpop.f32.mrb[24].mxu1 }
 0x8f0   :  { %2366 = vst.msk [vmem:[#allocation4 + $0x5] sm:$0x1] %vm1960_vm8, %v2362_v52  ;;  %v3889_v53 = vpop.f32.mrb[25].mxu1 }
 0x8f3   :  { %v2443_v54 = vpop.f32.mrb[26].mxu0 }
 0x8f4   :  { %2447 = vst.msk [vmem:[#allocation4 + $0x6] sm:$0x1] %vm1960_vm8, %v2443_v54  ;;  %v3900_v55 = vpop.f32.mrb[27].mxu0 }
 0x8f7   :  { %v2524_v56 = vpop.f32.mrb[26].mxu1 }
 0x8f8   :  { %2528 = vst.msk [vmem:[#allocation4 + $0x7] sm:$0x1] %vm1960_vm8, %v2524_v56  ;;  %v3911_v57 = vpop.f32.mrb[27].mxu1 }
 0x8ff   :  { %v2529_v59 = vld [vmem:[#allocation4] sm:$0xff] }
 0x900   :  { %v2531_v60 = vadd.f32 %v2530_v58, %v2529_v59 }
 0x902   :  { %v2532_v61 = vsel %vm1026_vm5, %v2531_v60, -inf }
 0x903   :  { %2533 = vmax.xlane.f32.xlu1 %v2532_v61 }
 0x990   :  { %v2534_v62 = vpop.xlane.xlu1 %2533 }
 0x991   :  { %v2535_v63 = vsub.f32 %v2531_v60, %v2534_v62 }
 0x993   :  { %v2536_v0 = vmul.f32 1.442695, %v2535_v63 }
 0x995   :  { %4404 = vpow2.f32 %v2536_v0 }
 0x99f   :  { %v4405_v1 = vpop.eup %4404 }
 0x9a0   :  { %v2538_v2 = vsel %vm1026_vm5, %v4405_v1, 0.0 }
 0x9a1   :  { %2539 = vadd.xlane.f32.xlu0 %v2538_v2 }
 0x9a2   :  { %4419 = shalt.err (!%p4416_p4)
}
 0x9a3   :  { %s4420_s10 = scalar_lea.hbm %s5889_s15, 128 }
 0x9a4   :  { %p4421_p5 = scmp.ne.s32.totalorder %s5889_s15, %s4420_s10  ;;  %p4424_p6 = scmp.lt.u32.totalorder %s4420_s10, %s5889_s15 }
 0x9a6   :  { %p4426_p7 = pnand %p4424_p6, %p4421_p5 }
 0x9a8   :  { %4429 = shalt.err (!%p4426_p7)
}
 0x9a9   :  { %2570 = dma.vmem_to_hbm [thread:$0]  %s2568_s22, 128, %s5889_s15, [#allocation8]  }
 0x9aa   :  { %s4486_s11 = smov [#allocation9]  }
 0x9ab   :  { %s2577_s9 = sshll.u32 %s4486_s11, 4  ;;  %s2578_s9 = int_to_ptr.vmem [resolvable:$true] %s2577_s9 }
 0x9ac   :  { %s4430_s25 = scalar_lea.vmem %s2578_s9, 128  ;;  %p4435_p9 = scmp.lt.s32.totalorder %s2578_s9, %s2578_s9 }
 0x9ad   :  { %p4431_p8 = scmp.ne.s32.totalorder %s2578_s9, %s4430_s25  ;;  %p4436_p10 = scmp.lt.s32.totalorder %s4430_s25, %s4430_s25 }
 0x9af   :  { %p4437_p11 = por %p4436_p10, %p4435_p9 }
 0x9b1   :  { %p4438_p12 = pnand %p4437_p11, %p4431_p8 }
 0x9b7   :  { %2547 = vrot.lane.b32.xlu0 %v5679_v37, %s4482_s6 }
 0xa2e   :  { %v2540_v4 = vpop.xlane.xlu0 %2539 }
 0xa2f   :  { %4406 = vrcp.f32 %v2540_v4 }
 0xa32   :  { %v2548_v5 = vpop.permute.xlu0 %2547 }
 0xa33   :  { %2550 = vst.msk [vmem:[#allocation9] sm:$0xff] %vm1887_vm7, %v2548_v5 }
 0xa34   :  { %4441 = shalt.err (!%p4438_p12)
}
 0xa35   :  { %s4442_s26 = scalar_lea.hbm %s5890_s16, 128 }
 0xa36   :  { %p4443_p13 = scmp.ne.s32.totalorder %s5890_s16, %s4442_s26  ;;  %p4446_p0 = scmp.lt.u32.totalorder %s4442_s26, %s5890_s16 }
 0xa38   :  { %p4448_p1 = pnand %p4446_p0, %p4443_p13 }
 0xa3a   :  { %4451 = shalt.err (!%p4448_p1)
}
 0xa3b   :  { %2580 = dma.vmem_to_hbm [thread:$0]  %s2578_s9, 128, %s5890_s16, [#allocation8]   ;;  %v4407_v37 = vpop.eup %4406 }
 0xa3c   :  { %s4487_s1 = smov [#allocation5]   ;;  %v2542_v6 = vmul.f32 %v4407_v37, %v4405_v1 }
 0xa3d   :  { %s2557_s17 = sshll.u32 %s4487_s1, 4  ;;  %s2558_s17 = int_to_ptr.vmem [resolvable:$true] %s2557_s17 }
 0xa3e   :  { %2543 = vst.msk [vmem:[#allocation5] sm:$0xff] %vm1026_vm5, %v2542_v6  ;;  %s4452_s18 = scalar_lea.vmem %s2558_s17, 128  ;;  %p4457_p3 = scmp.lt.s32.totalorder %s2558_s17, %s2558_s17 }
 0xa3f   :  { %p4453_p2 = scmp.ne.s32.totalorder %s2558_s17, %s4452_s18  ;;  %p4458_p4 = scmp.lt.s32.totalorder %s4452_s18, %s4452_s18 }
 0xa41   :  { %p4459_p5 = por %p4458_p4, %p4457_p3 }
 0xa43   :  { %p4460_p6 = pnand %p4459_p5, %p4453_p2 }
 0xa45   :  { %4463 = shalt.err (!%p4460_p6)
}
 0xa46   :  { %s4464_s21 = scalar_lea.hbm %s5888_s14, 128 }
 0xa47   :  { %p4465_p7 = scmp.ne.s32.totalorder %s5888_s14, %s4464_s21  ;;  %p4468_p8 = scmp.lt.u32.totalorder %s4464_s21, %s5888_s14 }
 0xa49   :  { %p4470_p9 = pnand %p4468_p8, %p4465_p7 }
 0xa4b   :  { %4473 = shalt.err (!%p4470_p9)
}
 0xa4c   :  { %2560 = dma.vmem_to_hbm [thread:$0]  %s2558_s17, 128, %s5888_s14, [#allocation6]  }
 0xa4d   :  { %4474 = dma.done.wait [#allocation6], 128  }
 0xa4e   :  { %4475 = vsyncadd [#allocation6], 4294967168 }
 0xa4f   :  { %4476 = dma.done.wait [#allocation8], 256  }
 0xa50   :  { %4477 = vsyncadd [#allocation8], 4294967040 }
 0xa51   :  { %2590 = vsyncpa [#allocation6], 1 }
 0xa52   :  { %2591 = vsyncpa [#allocation8], 1 }

</bundles_post_ra>
